<compile_context>
chip_gen: v6e
topology: v6e:2x2x1
jax: 0.10.0
libtpu: 0.0.40
codegen_flags: <defaults>
</compile_context>

<pallas_src>
import jax
import jax.numpy as jnp
from jax import lax
from jax.experimental import pallas as pl
from jax.experimental.pallas import tpu as pltpu

_CHUNK = 8  # source-node (j) chunk; 8 sublanes matches f32 packing


def _gnn_kernel(x_ref, adj_ref,
                wr1_ref, wo1_ref, b1_ref, g1_ref, be1_ref,
                wr3_ref, wo3_ref, b3_ref, g3_ref, be3_ref,
                wla_ref, wlb_ref, blin_ref,
                out_ref,
                c1_ref, h1_ref, c3_ref):
    B, N, Cin = x_ref.shape
    H = wr1_ref.shape[1]
    O = wr3_ref.shape[1]
    n_rows = B * N
    eps = jnp.float32(1e-5)
    neg_inf = jnp.float32(-jnp.inf)
    inv_rows = jnp.float32(1.0 / n_rows)

    def rel_aggregate(src_ref, n_ch, w_rel, dst_ref):
        # For each batch b:
        #   aggT[c, i] = max_{j : adj[b,j,i] != 0} src[b,j,c]   (0 if node i isolated)
        #   dst[b]     = agg @ w_rel   (computed as a transposed-LHS dot on aggT)
        # Target nodes i live on the 128-lane axis during the masked max; channels c
        # on sublanes; the j reduction is a running elementwise max over 8-row chunks,
        # so no (N, N, C) intermediate is ever materialized.
        nj, rem = divmod(N, _CHUNK)

        def masked_max(a, h, acc):
            # a: (chunk, N) adjacency slab (source j rows, target i on lanes), f32
            # h: (chunk, n_ch) source-node features
            masked = jnp.where(a[:, None, :] != 0.0, h[:, :, None], neg_inf)  # (chunk, C, N)
            return jnp.maximum(acc, jnp.max(masked, axis=0))                  # (C, N)

        def batch_body(b, carry):
            def j_body(jc, acc):
                j0 = pl.multiple_of(jc * _CHUNK, _CHUNK)
                a = adj_ref[b, pl.ds(j0, _CHUNK), :]
                h = src_ref[b, pl.ds(j0, _CHUNK), :]
                return masked_max(a, h, acc)

            acc0 = jnp.full((n_ch, N), neg_inf, dtype=jnp.float32)
            acc = lax.fori_loop(0, nj, j_body, acc0, unroll=True)
            if rem:  # static tail chunk when N % 8 != 0
                a = adj_ref[b, pl.ds(nj * _CHUNK, rem), :]
                h = src_ref[b, pl.ds(nj * _CHUNK, rem), :]
                acc = masked_max(a, h, acc)

            # Isolated nodes: torch sets rows that stayed at -inf to 0.
            aggT = jnp.where(acc == neg_inf, jnp.float32(0.0), acc)           # (C, N)
            # rel[i, o] = sum_c aggT[c, i] * w_rel[c, o]  -> (N, Cout), one MXU dot.
            rel = lax.dot_general(aggT, w_rel, (((0,), (0,)), ((), ())),
                                  preferred_element_type=jnp.float32)
            dst_ref[b] = rel
            return carry

        lax.fori_loop(0, B, batch_body, 0)

    def batch_norm(h2d, gamma, beta):
        # BatchNorm1d, training mode, biased variance; two-pass (no E[x^2]-mean^2).
        mean = jnp.sum(h2d, axis=0, keepdims=True) * inv_rows
        centered = h2d - mean
        var = jnp.sum(centered * centered, axis=0, keepdims=True) * inv_rows
        scale = gamma * lax.rsqrt(var + eps)
        return centered * scale + beta

    x2d = x_ref[...].reshape(n_rows, Cin)

    # --- layer 1: conv1 -> relu -> bn1 ---
    rel_aggregate(x_ref, Cin, wr1_ref[...], c1_ref)
    h1 = (c1_ref[...].reshape(n_rows, H)
          + jnp.dot(x2d, wo1_ref[...], preferred_element_type=jnp.float32)
          + b1_ref[...])
    h1 = batch_norm(jnp.maximum(h1, 0.0), g1_ref[...], be1_ref[...])
    h1_ref[...] = h1.reshape(B, N, H)          # needed as a ref for conv3 aggregation

    # --- layer 3: conv3 -> relu -> bn3 ---
    rel_aggregate(h1_ref, H, wr3_ref[...], c3_ref)
    h3 = (c3_ref[...].reshape(n_rows, O)
          + jnp.dot(h1, wo3_ref[...], preferred_element_type=jnp.float32)
          + b3_ref[...])
    h3 = batch_norm(jnp.maximum(h3, 0.0), g3_ref[...], be3_ref[...])

    # --- final Linear over concat([h1, h3], -1) as two dots (no lane concat) ---
    out = (jnp.dot(h1, wla_ref[...], preferred_element_type=jnp.float32)
           + jnp.dot(h3, wlb_ref[...], preferred_element_type=jnp.float32)
           + blin_ref[...])
    out_ref[...] = jnp.maximum(out, 0.0)       # (B*N, out_ch), lane-contiguous rows


def gnn_forward(x, adj, params):
    B, N, _ = x.shape
    hidden = params["w_rel1"].shape[1]
    out_ch = params["w_rel3"].shape[1]

    # One-time weight prep only (no activation/adj preprocessing in the wrapper).
    w_lin_a = params["w_lin"][:hidden]                                   # (H, O)
    w_lin_b = params["w_lin"][hidden:]                                   # (O, O)

    args = (x, adj,
            params["w_rel1"], params["w_root1"], params["b1"],
            params["bn1_gamma"], params["bn1_beta"],
            params["w_rel3"], params["w_root3"], params["b3"],
            params["bn3_gamma"], params["bn3_beta"],
            w_lin_a, w_lin_b, params["b_lin"])

    # Right-sized VMEM budget from the actual resident footprint, capped well below
    # v7x's 64 MiB physical per-TC VMEM (and below v5e/v6e's 128 MiB).
    arg_bytes = sum(int(a.size) * a.dtype.itemsize for a in args)
    scratch_bytes = 4 * B * N * (hidden + hidden + out_ch)
    out_bytes = 4 * B * N * out_ch
    footprint = arg_bytes + scratch_bytes + out_bytes
    vmem_limit = int(min(48 << 20, max(16 << 20, 4 * footprint)))

    vmem = pl.BlockSpec(memory_space=pltpu.MemorySpace.VMEM)
    out2d = pl.pallas_call(
        _gnn_kernel,
        out_shape=jax.ShapeDtypeStruct((B * N, out_ch), jnp.float32),
        in_specs=[vmem] * len(args),
        out_specs=vmem,
        scratch_shapes=[pltpu.VMEM((B, N, hidden), jnp.float32),   # conv1 rel part
                        pltpu.VMEM((B, N, hidden), jnp.float32),   # h1 (conv3 input)
                        pltpu.VMEM((B, N, out_ch), jnp.float32)],  # conv3 rel part
        compiler_params=pltpu.CompilerParams(vmem_limit_bytes=vmem_limit),
    )(*args)
    return out2d.reshape(B, N, out_ch)


def _reference(x, adj, p):
    # Pure-JAX f32 reference with the original (unfused) math.
    def conv(h, w_rel, w_root, b):
        masked = jnp.where(adj[:, :, :, None] != 0.0, h[:, :, None, :], -jnp.inf)
        agg = jnp.max(masked, axis=1)
        agg = jnp.where(jnp.isneginf(agg), 0.0, agg)
        return agg @ w_rel + b + h @ w_root

    def bn(h, g, be):
        h2 = h.reshape(-1, h.shape[-1])
        m = h2.mean(0, keepdims=True)
        v = ((h2 - m) ** 2).mean(0, keepdims=True)
        return ((h2 - m) / jnp.sqrt(v + 1e-5) * g + be).reshape(h.shape)

    x1 = bn(jax.nn.relu(conv(x, p["w_rel1"], p["w_root1"], p["b1"])),
            p["bn1_gamma"], p["bn1_beta"])
    x3 = bn(jax.nn.relu(conv(x1, p["w_rel3"], p["w_root3"], p["b3"])),
            p["bn3_gamma"], p["bn3_beta"])
    xc = jnp.concatenate([x1, x3], axis=-1)
    return jax.nn.relu(xc @ p["w_lin"] + p["b_lin"])


if __name__ == "__main__":
    B, N = 2, 16
    in_ch, hidden_ch, out_ch = 4, 32, 16

    key = jax.random.PRNGKey(0)
    ks = jax.random.split(key, 14)

    x = jax.random.normal(ks[0], (B, N, in_ch), dtype=jnp.float32)
    adj = (jax.random.uniform(ks[1], (B, N, N)) > 0.6).astype(jnp.float32)

    def init(k, shape, scale=0.2):
        return scale * jax.random.normal(k, shape, dtype=jnp.float32)

    params = {
        # conv1: DenseGraphConv(in_ch -> hidden_ch, aggr='max')
        "w_rel1": init(ks[2], (in_ch, hidden_ch)),
        "w_root1": init(ks[3], (in_ch, hidden_ch)),
        "b1": init(ks[4], (1, hidden_ch)),
        "bn1_gamma": 1.0 + init(ks[5], (1, hidden_ch), 0.05),
        "bn1_beta": init(ks[6], (1, hidden_ch), 0.05),
        # conv3: DenseGraphConv(hidden_ch -> out_ch, aggr='max')
        "w_rel3": init(ks[7], (hidden_ch, out_ch)),
        "w_root3": init(ks[8], (hidden_ch, out_ch)),
        "b3": init(ks[9], (1, out_ch)),
        "bn3_gamma": 1.0 + init(ks[10], (1, out_ch), 0.05),
        "bn3_beta": init(ks[11], (1, out_ch), 0.05),
        # lin: Linear(hidden_ch + out_ch -> out_ch)
        "w_lin": init(ks[12], (hidden_ch + out_ch, out_ch)),
        "b_lin": init(ks[13], (1, out_ch)),
    }

    out = gnn_forward(x, adj, params)
    out = jax.block_until_ready(out)
    assert out.shape == (B, N, out_ch), out.shape

    ref = jax.block_until_ready(_reference(x, adj, params))
    assert jnp.allclose(out, ref, rtol=1e-3, atol=1e-3), float(jnp.max(jnp.abs(out - ref)))

    print("KERNEL_OK")
</pallas_src>

<mosaic_0001>
module attributes {stable_mosaic.version = 11 : i64} {
  func.func @_gnn_kernel(%arg0: memref<2x16x4xf32, #tpu.memory_space<vmem>>, %arg1: memref<2x16x16xf32, #tpu.memory_space<vmem>>, %arg2: memref<4x32xf32, #tpu.memory_space<vmem>>, %arg3: memref<4x32xf32, #tpu.memory_space<vmem>>, %arg4: memref<1x32xf32, #tpu.memory_space<vmem>>, %arg5: memref<1x32xf32, #tpu.memory_space<vmem>>, %arg6: memref<1x32xf32, #tpu.memory_space<vmem>>, %arg7: memref<32x16xf32, #tpu.memory_space<vmem>>, %arg8: memref<32x16xf32, #tpu.memory_space<vmem>>, %arg9: memref<1x16xf32, #tpu.memory_space<vmem>>, %arg10: memref<1x16xf32, #tpu.memory_space<vmem>>, %arg11: memref<1x16xf32, #tpu.memory_space<vmem>>, %arg12: memref<32x16xf32, #tpu.memory_space<vmem>>, %arg13: memref<16x16xf32, #tpu.memory_space<vmem>>, %arg14: memref<1x16xf32, #tpu.memory_space<vmem>>, %arg15: memref<32x16xf32, #tpu.memory_space<vmem>>, %arg16: memref<2x16x32xf32, #tpu.memory_space<vmem>>, %arg17: memref<2x16x32xf32, #tpu.memory_space<vmem>>, %arg18: memref<2x16x16xf32, #tpu.memory_space<vmem>>) attributes {dimension_semantics = [], scalar_prefetch = 0 : i64, scratch_operands = 3 : i64, tpu.core_type = #tpu.core_type<tc>} {
    %c0 = arith.constant 0 : index
    %c0_0 = arith.constant 0 : index
    %c0_1 = arith.constant 0 : index
    %0 = vector.load %arg0[%c0, %c0_0, %c0_1] : memref<2x16x4xf32, #tpu.memory_space<vmem>>, vector<2x16x4xf32>
    %1 = vector.shape_cast %0 : vector<2x16x4xf32> to vector<32x4xf32>
    %c0_2 = arith.constant 0 : index
    %c0_3 = arith.constant 0 : index
    %2 = vector.load %arg2[%c0_2, %c0_3] : memref<4x32xf32, #tpu.memory_space<vmem>>, vector<4x32xf32>
    %cst = arith.constant 0xFF800000 : f32
    %c0_i32 = arith.constant 0 : i32
    %c2_i32 = arith.constant 2 : i32
    %3 = arith.addi %c0_i32, %c2_i32 : i32
    %c1_i32 = arith.constant 1 : i32
    scf.for %arg19 = %c0_i32 to %3 step %c1_i32  : i32 {
      %81 = vector.broadcast %cst : f32 to vector<4x16xf32>
      %c0_i32_62 = arith.constant 0 : i32
      %c8_i32 = arith.constant 8 : i32
      %82 = arith.muli %c0_i32_62, %c8_i32 : i32
      %83 = tpu.assume_multiple %82, 8 : i32
      %84 = arith.index_cast %arg19 : i32 to index
      %85 = arith.index_cast %83 : i32 to index
      %c0_63 = arith.constant 0 : index
      %86 = vector.load %arg1[%84, %85, %c0_63] : memref<2x16x16xf32, #tpu.memory_space<vmem>>, vector<1x8x16xf32>
      %87 = vector.shape_cast %86 : vector<1x8x16xf32> to vector<8x16xf32>
      %88 = arith.index_cast %arg19 : i32 to index
      %89 = arith.index_cast %83 : i32 to index
      %c0_64 = arith.constant 0 : index
      %90 = vector.load %arg0[%88, %89, %c0_64] : memref<2x16x4xf32, #tpu.memory_space<vmem>>, vector<1x8x4xf32>
      %91 = vector.shape_cast %90 : vector<1x8x4xf32> to vector<8x4xf32>
      %92 = vector.shape_cast %87 : vector<8x16xf32> to vector<8x1x16xf32>
      %cst_65 = arith.constant 0.000000e+00 : f32
      %93 = vector.broadcast %cst_65 : f32 to vector<8x1x16xf32>
      %94 = arith.cmpf one, %92, %93 : vector<8x1x16xf32>
      %95 = vector.shape_cast %91 : vector<8x4xf32> to vector<8x4x1xf32>
      %96 = vector.shape_cast %94 : vector<8x1x16xi1> to vector<8x1x16xi1>
      %97 = vector.broadcast %96 : vector<8x1x16xi1> to vector<8x4x16xi1>
      %98 = vector.shape_cast %95 : vector<8x4x1xf32> to vector<8x4x1xf32>
      %99 = vector.broadcast %98 : vector<8x4x1xf32> to vector<8x4x16xf32>
      %100 = vector.broadcast %cst : f32 to vector<8x4x16xf32>
      %101 = arith.select %97, %99, %100 : vector<8x4x16xi1>, vector<8x4x16xf32>
      %cst_66 = arith.constant dense<0xFF800000> : vector<4x16xf32>
      %102 = vector.multi_reduction <maximumf>, %101, %cst_66 [0] : vector<8x4x16xf32> to vector<4x16xf32>
      %103 = arith.maximumf %81, %102 : vector<4x16xf32>
      %c1_i32_67 = arith.constant 1 : i32
      %c8_i32_68 = arith.constant 8 : i32
      %104 = arith.muli %c1_i32_67, %c8_i32_68 : i32
      %105 = tpu.assume_multiple %104, 8 : i32
      %106 = arith.index_cast %arg19 : i32 to index
      %107 = arith.index_cast %105 : i32 to index
      %c0_69 = arith.constant 0 : index
      %108 = vector.load %arg1[%106, %107, %c0_69] : memref<2x16x16xf32, #tpu.memory_space<vmem>>, vector<1x8x16xf32>
      %109 = vector.shape_cast %108 : vector<1x8x16xf32> to vector<8x16xf32>
      %110 = arith.index_cast %arg19 : i32 to index
      %111 = arith.index_cast %105 : i32 to index
      %c0_70 = arith.constant 0 : index
      %112 = vector.load %arg0[%110, %111, %c0_70] : memref<2x16x4xf32, #tpu.memory_space<vmem>>, vector<1x8x4xf32>
      %113 = vector.shape_cast %112 : vector<1x8x4xf32> to vector<8x4xf32>
      %114 = vector.shape_cast %109 : vector<8x16xf32> to vector<8x1x16xf32>
      %cst_71 = arith.constant 0.000000e+00 : f32
      %115 = vector.broadcast %cst_71 : f32 to vector<8x1x16xf32>
      %116 = arith.cmpf one, %114, %115 : vector<8x1x16xf32>
      %117 = vector.shape_cast %113 : vector<8x4xf32> to vector<8x4x1xf32>
      %118 = vector.shape_cast %116 : vector<8x1x16xi1> to vector<8x1x16xi1>
      %119 = vector.broadcast %118 : vector<8x1x16xi1> to vector<8x4x16xi1>
      %120 = vector.shape_cast %117 : vector<8x4x1xf32> to vector<8x4x1xf32>
      %121 = vector.broadcast %120 : vector<8x4x1xf32> to vector<8x4x16xf32>
      %122 = vector.broadcast %cst : f32 to vector<8x4x16xf32>
      %123 = arith.select %119, %121, %122 : vector<8x4x16xi1>, vector<8x4x16xf32>
      %cst_72 = arith.constant dense<0xFF800000> : vector<4x16xf32>
      %124 = vector.multi_reduction <maximumf>, %123, %cst_72 [0] : vector<8x4x16xf32> to vector<4x16xf32>
      %125 = arith.maximumf %103, %124 : vector<4x16xf32>
      %c2_i32_73 = arith.constant 2 : i32
      %126 = vector.broadcast %cst : f32 to vector<4x16xf32>
      %127 = arith.cmpf oeq, %125, %126 : vector<4x16xf32>
      %cst_74 = arith.constant 0.000000e+00 : f32
      %128 = vector.broadcast %cst_74 : f32 to vector<4x16xf32>
      %129 = arith.select %127, %128, %125 : vector<4x16xi1>, vector<4x16xf32>
      %cst_75 = arith.constant dense<0.000000e+00> : vector<16x32xf32>
      %130 = tpu.matmul %129, %2, %cst_75 {dimension_numbers = #tpu.dot_dimension_numbers<[0], [0], [1], [1], [0, 1, 1, 1], [], []>} : vector<4x16xf32>, vector<4x32xf32>, vector<16x32xf32> -> vector<16x32xf32>
      %131 = arith.index_cast %arg19 : i32 to index
      %c0_76 = arith.constant 0 : index
      %c0_77 = arith.constant 0 : index
      %132 = vector.load %arg16[%131, %c0_76, %c0_77] : memref<2x16x32xf32, #tpu.memory_space<vmem>>, vector<1x16x32xf32>
      %133 = vector.shape_cast %132 : vector<1x16x32xf32> to vector<16x32xf32>
      %134 = vector.shape_cast %130 : vector<16x32xf32> to vector<1x16x32xf32>
      tpu.vector_store %arg16[%131, %c0_76, %c0_77], %134 {strides = array<i32>} : memref<2x16x32xf32, #tpu.memory_space<vmem>>, vector<1x16x32xf32>,
    }
    %c2_i32_4 = arith.constant 2 : i32
    %c0_5 = arith.constant 0 : index
    %c0_6 = arith.constant 0 : index
    %c0_7 = arith.constant 0 : index
    %4 = vector.load %arg16[%c0_5, %c0_6, %c0_7] : memref<2x16x32xf32, #tpu.memory_space<vmem>>, vector<2x16x32xf32>
    %5 = vector.shape_cast %4 : vector<2x16x32xf32> to vector<32x32xf32>
    %c0_8 = arith.constant 0 : index
    %c0_9 = arith.constant 0 : index
    %6 = vector.load %arg3[%c0_8, %c0_9] : memref<4x32xf32, #tpu.memory_space<vmem>>, vector<4x32xf32>
    %cst_10 = arith.constant dense<0.000000e+00> : vector<32x32xf32>
    %7 = tpu.matmul %1, %6, %cst_10 {dimension_numbers = #tpu.dot_dimension_numbers<[1], [0], [0], [1], [0, 0, 1, 1], [], []>} : vector<32x4xf32>, vector<4x32xf32>, vector<32x32xf32> -> vector<32x32xf32>
    %8 = arith.addf %5, %7 : vector<32x32xf32>
    %c0_11 = arith.constant 0 : index
    %c0_12 = arith.constant 0 : index
    %9 = vector.load %arg4[%c0_11, %c0_12] : memref<1x32xf32, #tpu.memory_space<vmem>>, vector<1x32xf32>
    %10 = vector.broadcast %9 : vector<1x32xf32> to vector<32x32xf32>
    %11 = arith.addf %8, %10 : vector<32x32xf32>
    %cst_13 = arith.constant 0.000000e+00 : f32
    %12 = vector.broadcast %cst_13 : f32 to vector<32x32xf32>
    %13 = arith.maximumf %11, %12 : vector<32x32xf32>
    %c0_14 = arith.constant 0 : index
    %c0_15 = arith.constant 0 : index
    %14 = vector.load %arg5[%c0_14, %c0_15] : memref<1x32xf32, #tpu.memory_space<vmem>>, vector<1x32xf32>
    %c0_16 = arith.constant 0 : index
    %c0_17 = arith.constant 0 : index
    %15 = vector.load %arg6[%c0_16, %c0_17] : memref<1x32xf32, #tpu.memory_space<vmem>>, vector<1x32xf32>
    %cst_18 = arith.constant dense<0.000000e+00> : vector<32xf32>
    %16 = vector.multi_reduction <add>, %13, %cst_18 [0] : vector<32x32xf32> to vector<32xf32>
    %17 = vector.shape_cast %16 : vector<32xf32> to vector<1x32xf32>
    %cst_19 = arith.constant 3.125000e-02 : f32
    %18 = vector.broadcast %cst_19 : f32 to vector<1x32xf32>
    %19 = arith.mulf %17, %18 : vector<1x32xf32>
    %20 = vector.broadcast %19 : vector<1x32xf32> to vector<32x32xf32>
    %21 = arith.subf %13, %20 : vector<32x32xf32>
    %22 = arith.mulf %21, %21 : vector<32x32xf32>
    %cst_20 = arith.constant dense<0.000000e+00> : vector<32xf32>
    %23 = vector.multi_reduction <add>, %22, %cst_20 [0] : vector<32x32xf32> to vector<32xf32>
    %24 = vector.shape_cast %23 : vector<32xf32> to vector<1x32xf32>
    %cst_21 = arith.constant 3.125000e-02 : f32
    %25 = vector.broadcast %cst_21 : f32 to vector<1x32xf32>
    %26 = arith.mulf %24, %25 : vector<1x32xf32>
    %cst_22 = arith.constant 9.99999974E-6 : f32
    %27 = vector.broadcast %cst_22 : f32 to vector<1x32xf32>
    %28 = arith.addf %26, %27 : vector<1x32xf32>
    %29 = math.rsqrt %28 : vector<1x32xf32>
    %30 = arith.mulf %14, %29 : vector<1x32xf32>
    %31 = vector.broadcast %30 : vector<1x32xf32> to vector<32x32xf32>
    %32 = arith.mulf %21, %31 : vector<32x32xf32>
    %33 = vector.broadcast %15 : vector<1x32xf32> to vector<32x32xf32>
    %34 = arith.addf %32, %33 : vector<32x32xf32>
    %35 = vector.shape_cast %34 : vector<32x32xf32> to vector<2x16x32xf32>
    %c0_23 = arith.constant 0 : index
    %c0_24 = arith.constant 0 : index
    %c0_25 = arith.constant 0 : index
    %36 = vector.load %arg17[%c0_23, %c0_24, %c0_25] : memref<2x16x32xf32, #tpu.memory_space<vmem>>, vector<2x16x32xf32>
    tpu.vector_store %arg17[%c0_23, %c0_24, %c0_25], %35 {strides = array<i32>} : memref<2x16x32xf32, #tpu.memory_space<vmem>>, vector<2x16x32xf32>,
    %c0_26 = arith.constant 0 : index
    %c0_27 = arith.constant 0 : index
    %37 = vector.load %arg7[%c0_26, %c0_27] : memref<32x16xf32, #tpu.memory_space<vmem>>, vector<32x16xf32>
    %cst_28 = arith.constant 0xFF800000 : f32
    %c0_i32_29 = arith.constant 0 : i32
    %c2_i32_30 = arith.constant 2 : i32
    %38 = arith.addi %c0_i32_29, %c2_i32_30 : i32
    %c1_i32_31 = arith.constant 1 : i32
    scf.for %arg19 = %c0_i32_29 to %38 step %c1_i32_31  : i32 {
      %81 = vector.broadcast %cst_28 : f32 to vector<32x16xf32>
      %c0_i32_62 = arith.constant 0 : i32
      %c8_i32 = arith.constant 8 : i32
      %82 = arith.muli %c0_i32_62, %c8_i32 : i32
      %83 = tpu.assume_multiple %82, 8 : i32
      %84 = arith.index_cast %arg19 : i32 to index
      %85 = arith.index_cast %83 : i32 to index
      %c0_63 = arith.constant 0 : index
      %86 = vector.load %arg1[%84, %85, %c0_63] : memref<2x16x16xf32, #tpu.memory_space<vmem>>, vector<1x8x16xf32>
      %87 = vector.shape_cast %86 : vector<1x8x16xf32> to vector<8x16xf32>
      %88 = arith.index_cast %arg19 : i32 to index
      %89 = arith.index_cast %83 : i32 to index
      %c0_64 = arith.constant 0 : index
      %90 = vector.load %arg17[%88, %89, %c0_64] : memref<2x16x32xf32, #tpu.memory_space<vmem>>, vector<1x8x32xf32>
      %91 = vector.shape_cast %90 : vector<1x8x32xf32> to vector<8x32xf32>
      %92 = vector.shape_cast %87 : vector<8x16xf32> to vector<8x1x16xf32>
      %cst_65 = arith.constant 0.000000e+00 : f32
      %93 = vector.broadcast %cst_65 : f32 to vector<8x1x16xf32>
      %94 = arith.cmpf one, %92, %93 : vector<8x1x16xf32>
      %95 = vector.shape_cast %91 : vector<8x32xf32> to vector<8x32x1xf32>
      %96 = vector.shape_cast %94 : vector<8x1x16xi1> to vector<8x1x16xi1>
      %97 = vector.broadcast %96 : vector<8x1x16xi1> to vector<8x32x16xi1>
      %98 = vector.shape_cast %95 : vector<8x32x1xf32> to vector<8x32x1xf32>
      %99 = vector.broadcast %98 : vector<8x32x1xf32> to vector<8x32x16xf32>
      %100 = vector.broadcast %cst_28 : f32 to vector<8x32x16xf32>
      %101 = arith.select %97, %99, %100 : vector<8x32x16xi1>, vector<8x32x16xf32>
      %cst_66 = arith.constant dense<0xFF800000> : vector<32x16xf32>
      %102 = vector.multi_reduction <maximumf>, %101, %cst_66 [0] : vector<8x32x16xf32> to vector<32x16xf32>
      %103 = arith.maximumf %81, %102 : vector<32x16xf32>
      %c1_i32_67 = arith.constant 1 : i32
      %c8_i32_68 = arith.constant 8 : i32
      %104 = arith.muli %c1_i32_67, %c8_i32_68 : i32
      %105 = tpu.assume_multiple %104, 8 : i32
      %106 = arith.index_cast %arg19 : i32 to index
      %107 = arith.index_cast %105 : i32 to index
      %c0_69 = arith.constant 0 : index
      %108 = vector.load %arg1[%106, %107, %c0_69] : memref<2x16x16xf32, #tpu.memory_space<vmem>>, vector<1x8x16xf32>
      %109 = vector.shape_cast %108 : vector<1x8x16xf32> to vector<8x16xf32>
      %110 = arith.index_cast %arg19 : i32 to index
      %111 = arith.index_cast %105 : i32 to index
      %c0_70 = arith.constant 0 : index
      %112 = vector.load %arg17[%110, %111, %c0_70] : memref<2x16x32xf32, #tpu.memory_space<vmem>>, vector<1x8x32xf32>
      %113 = vector.shape_cast %112 : vector<1x8x32xf32> to vector<8x32xf32>
      %114 = vector.shape_cast %109 : vector<8x16xf32> to vector<8x1x16xf32>
      %cst_71 = arith.constant 0.000000e+00 : f32
      %115 = vector.broadcast %cst_71 : f32 to vector<8x1x16xf32>
      %116 = arith.cmpf one, %114, %115 : vector<8x1x16xf32>
      %117 = vector.shape_cast %113 : vector<8x32xf32> to vector<8x32x1xf32>
      %118 = vector.shape_cast %116 : vector<8x1x16xi1> to vector<8x1x16xi1>
      %119 = vector.broadcast %118 : vector<8x1x16xi1> to vector<8x32x16xi1>
      %120 = vector.shape_cast %117 : vector<8x32x1xf32> to vector<8x32x1xf32>
      %121 = vector.broadcast %120 : vector<8x32x1xf32> to vector<8x32x16xf32>
      %122 = vector.broadcast %cst_28 : f32 to vector<8x32x16xf32>
      %123 = arith.select %119, %121, %122 : vector<8x32x16xi1>, vector<8x32x16xf32>
      %cst_72 = arith.constant dense<0xFF800000> : vector<32x16xf32>
      %124 = vector.multi_reduction <maximumf>, %123, %cst_72 [0] : vector<8x32x16xf32> to vector<32x16xf32>
      %125 = arith.maximumf %103, %124 : vector<32x16xf32>
      %c2_i32_73 = arith.constant 2 : i32
      %126 = vector.broadcast %cst_28 : f32 to vector<32x16xf32>
      %127 = arith.cmpf oeq, %125, %126 : vector<32x16xf32>
      %cst_74 = arith.constant 0.000000e+00 : f32
      %128 = vector.broadcast %cst_74 : f32 to vector<32x16xf32>
      %129 = arith.select %127, %128, %125 : vector<32x16xi1>, vector<32x16xf32>
      %cst_75 = arith.constant dense<0.000000e+00> : vector<16x16xf32>
      %130 = tpu.matmul %129, %37, %cst_75 {dimension_numbers = #tpu.dot_dimension_numbers<[0], [0], [1], [1], [0, 1, 1, 1], [], []>} : vector<32x16xf32>, vector<32x16xf32>, vector<16x16xf32> -> vector<16x16xf32>
      %131 = arith.index_cast %arg19 : i32 to index
      %c0_76 = arith.constant 0 : index
      %c0_77 = arith.constant 0 : index
      %132 = vector.load %arg18[%131, %c0_76, %c0_77] : memref<2x16x16xf32, #tpu.memory_space<vmem>>, vector<1x16x16xf32>
      %133 = vector.shape_cast %132 : vector<1x16x16xf32> to vector<16x16xf32>
      %134 = vector.shape_cast %130 : vector<16x16xf32> to vector<1x16x16xf32>
      tpu.vector_store %arg18[%131, %c0_76, %c0_77], %134 {strides = array<i32>} : memref<2x16x16xf32, #tpu.memory_space<vmem>>, vector<1x16x16xf32>,
    }
    %c2_i32_32 = arith.constant 2 : i32
    %c0_33 = arith.constant 0 : index
    %c0_34 = arith.constant 0 : index
    %c0_35 = arith.constant 0 : index
    %39 = vector.load %arg18[%c0_33, %c0_34, %c0_35] : memref<2x16x16xf32, #tpu.memory_space<vmem>>, vector<2x16x16xf32>
    %40 = vector.shape_cast %39 : vector<2x16x16xf32> to vector<32x16xf32>
    %c0_36 = arith.constant 0 : index
    %c0_37 = arith.constant 0 : index
    %41 = vector.load %arg8[%c0_36, %c0_37] : memref<32x16xf32, #tpu.memory_space<vmem>>, vector<32x16xf32>
    %cst_38 = arith.constant dense<0.000000e+00> : vector<32x16xf32>
    %42 = tpu.matmul %34, %41, %cst_38 {dimension_numbers = #tpu.dot_dimension_numbers<[1], [0], [0], [1], [0, 0, 1, 1], [], []>} : vector<32x32xf32>, vector<32x16xf32>, vector<32x16xf32> -> vector<32x16xf32>
    %43 = arith.addf %40, %42 : vector<32x16xf32>
    %c0_39 = arith.constant 0 : index
    %c0_40 = arith.constant 0 : index
    %44 = vector.load %arg9[%c0_39, %c0_40] : memref<1x16xf32, #tpu.memory_space<vmem>>, vector<1x16xf32>
    %45 = vector.broadcast %44 : vector<1x16xf32> to vector<32x16xf32>
    %46 = arith.addf %43, %45 : vector<32x16xf32>
    %cst_41 = arith.constant 0.000000e+00 : f32
    %47 = vector.broadcast %cst_41 : f32 to vector<32x16xf32>
    %48 = arith.maximumf %46, %47 : vector<32x16xf32>
    %c0_42 = arith.constant 0 : index
    %c0_43 = arith.constant 0 : index
    %49 = vector.load %arg10[%c0_42, %c0_43] : memref<1x16xf32, #tpu.memory_space<vmem>>, vector<1x16xf32>
    %c0_44 = arith.constant 0 : index
    %c0_45 = arith.constant 0 : index
    %50 = vector.load %arg11[%c0_44, %c0_45] : memref<1x16xf32, #tpu.memory_space<vmem>>, vector<1x16xf32>
    %cst_46 = arith.constant dense<0.000000e+00> : vector<16xf32>
    %51 = vector.multi_reduction <add>, %48, %cst_46 [0] : vector<32x16xf32> to vector<16xf32>
    %52 = vector.shape_cast %51 : vector<16xf32> to vector<1x16xf32>
    %cst_47 = arith.constant 3.125000e-02 : f32
    %53 = vector.broadcast %cst_47 : f32 to vector<1x16xf32>
    %54 = arith.mulf %52, %53 : vector<1x16xf32>
    %55 = vector.broadcast %54 : vector<1x16xf32> to vector<32x16xf32>
    %56 = arith.subf %48, %55 : vector<32x16xf32>
    %57 = arith.mulf %56, %56 : vector<32x16xf32>
    %cst_48 = arith.constant dense<0.000000e+00> : vector<16xf32>
    %58 = vector.multi_reduction <add>, %57, %cst_48 [0] : vector<32x16xf32> to vector<16xf32>
    %59 = vector.shape_cast %58 : vector<16xf32> to vector<1x16xf32>
    %cst_49 = arith.constant 3.125000e-02 : f32
    %60 = vector.broadcast %cst_49 : f32 to vector<1x16xf32>
    %61 = arith.mulf %59, %60 : vector<1x16xf32>
    %cst_50 = arith.constant 9.99999974E-6 : f32
    %62 = vector.broadcast %cst_50 : f32 to vector<1x16xf32>
    %63 = arith.addf %61, %62 : vector<1x16xf32>
    %64 = math.rsqrt %63 : vector<1x16xf32>
    %65 = arith.mulf %49, %64 : vector<1x16xf32>
    %66 = vector.broadcast %65 : vector<1x16xf32> to vector<32x16xf32>
    %67 = arith.mulf %56, %66 : vector<32x16xf32>
    %68 = vector.broadcast %50 : vector<1x16xf32> to vector<32x16xf32>
    %69 = arith.addf %67, %68 : vector<32x16xf32>
    %c0_51 = arith.constant 0 : index
    %c0_52 = arith.constant 0 : index
    %70 = vector.load %arg12[%c0_51, %c0_52] : memref<32x16xf32, #tpu.memory_space<vmem>>, vector<32x16xf32>
    %cst_53 = arith.constant dense<0.000000e+00> : vector<32x16xf32>
    %71 = tpu.matmul %34, %70, %cst_53 {dimension_numbers = #tpu.dot_dimension_numbers<[1], [0], [0], [1], [0, 0, 1, 1], [], []>} : vector<32x32xf32>, vector<32x16xf32>, vector<32x16xf32> -> vector<32x16xf32>
    %c0_54 = arith.constant 0 : index
    %c0_55 = arith.constant 0 : index
    %72 = vector.load %arg13[%c0_54, %c0_55] : memref<16x16xf32, #tpu.memory_space<vmem>>, vector<16x16xf32>
    %cst_56 = arith.constant dense<0.000000e+00> : vector<32x16xf32>
    %73 = tpu.matmul %69, %72, %cst_56 {dimension_numbers = #tpu.dot_dimension_numbers<[1], [0], [0], [1], [0, 0, 1, 1], [], []>} : vector<32x16xf32>, vector<16x16xf32>, vector<32x16xf32> -> vector<32x16xf32>
    %74 = arith.addf %71, %73 : vector<32x16xf32>
    %c0_57 = arith.constant 0 : index
    %c0_58 = arith.constant 0 : index
    %75 = vector.load %arg14[%c0_57, %c0_58] : memref<1x16xf32, #tpu.memory_space<vmem>>, vector<1x16xf32>
    %76 = vector.broadcast %75 : vector<1x16xf32> to vector<32x16xf32>
    %77 = arith.addf %74, %76 : vector<32x16xf32>
    %cst_59 = arith.constant 0.000000e+00 : f32
    %78 = vector.broadcast %cst_59 : f32 to vector<32x16xf32>
    %79 = arith.maximumf %77, %78 : vector<32x16xf32>
    %c0_60 = arith.constant 0 : index
    %c0_61 = arith.constant 0 : index
    %80 = vector.load %arg15[%c0_60, %c0_61] : memref<32x16xf32, #tpu.memory_space<vmem>>, vector<32x16xf32>
    tpu.vector_store %arg15[%c0_60, %c0_61], %79 {strides = array<i32>} : memref<32x16xf32, #tpu.memory_space<vmem>>, vector<32x16xf32>,
    return
  }
}

</mosaic_0001>

<bundles_post_ra>
// kernel: tpu_custom_call.1
= control target key start
LH: loop header
LB: loop body
LE: loop exit
PB: predicated region body
PF: predicated region fallthrough
CT: control target
= control target key end

     0   :  { %s2363_s28 = smov 0   ;;  %s3337_s0 = inlined_call_operand.vmem [shape: f32[2,16,4], index: 0, kind: input, shape index: {}]   ;;  %s3338_s1 = inlined_call_operand.vmem [shape: f32[2,16,16], index: 1, kind: input, shape index: {}]   ;;  %s3339_s2 = inlined_call_operand.vmem [shape: f32[4,32], index: 2, kind: input, shape index: {}]   ;;  %s3340_s3 = inlined_call_operand.vmem [shape: f32[4,32], index: 3, kind: input, shape index: {}]   ;;  %s3341_s4 = inlined_call_operand.vmem [shape: f32[1,32], index: 4, kind: input, shape index: {}]   ;;  %s3342_s5 = inlined_call_operand.vmem [shape: f32[1,32], index: 5, kind: input, shape index: {}]   ;;  %s3343_s6 = inlined_call_operand.vmem [shape: f32[1,32], index: 6, kind: input, shape index: {}]   ;;  %s3344_s7 = inlined_call_operand.vmem [shape: f32[32,16], index: 7, kind: input, shape index: {}]   ;;  %s3345_s8 = inlined_call_operand.vmem [shape: f32[32,16], index: 8, kind: input, shape index: {}]   ;;  %s3346_s9 = inlined_call_operand.vmem [shape: f32[1,16], index: 9, kind: input, shape index: {}]   ;;  %s3347_s10 = inlined_call_operand.vmem [shape: f32[1,16], index: 10, kind: input, shape index: {}]   ;;  %s3348_s11 = inlined_call_operand.vmem [shape: f32[1,16], index: 11, kind: input, shape index: {}]   ;;  %s3349_s12 = inlined_call_operand.vmem [shape: f32[32,16], index: 12, kind: input, shape index: {}]   ;;  %s3350_s13 = inlined_call_operand.vmem [shape: f32[16,16], index: 13, kind: input, shape index: {}]   ;;  %s3351_s14 = inlined_call_operand.vmem [shape: f32[1,16], index: 14, kind: input, shape index: {}]   ;;  %s3352_s15 = inlined_call_operand.vmem [shape: f32[32,16], index: 15, kind: output, shape index: {}]  }
   0x1   :  { %v2341_v0 = vld [vmem:[%s3337_s0] sm:$0xff]  ;;  %v2346_v1 = vld [vmem:[%s3337_s0 + $0x8] sm:$0xff]  ;;  %v2351_v2 = vld [vmem:[%s3337_s0 + $0x10] sm:$0xff] }
   0x2   :  { %v2356_v3 = vld [vmem:[%s3337_s0 + $0x18] sm:$0xff]  ;;  %v2361_v4 = vld [vmem:[%s3339_s2] sm:$0xf] }
   0x3 LB: > { %v72_v5 = vlaneseq  ;;  %s2369_s29 = sshll.u32 %s2249_s28, 4  ;;  %v2255_v7 = vmov 1966171168   ;;  %v2256_v47 = vmov 0   ;;  %s60_s28 = sadd.s32 1, %s2249_s28   ;;  %s2249_s28 = sphi %s2363_s28, %s60_s28  }
   0x4   : > { %v70_v8 = vunpack.c.l.s4 %v2255_v7  ;;  %s65_s2 = scalar_lea.vmem %s3337_s0, %s2369_s29  ;;  %s63_s19 = scalar_lea.vmem %s3338_s1, %s2369_s29 }
   0x5   : > { %v73_v6 = vshrl.u32 %v72_v5, 7  ;;  %v66_v9 = vld [vmem:[%s65_s2] sm:$0xff]  ;;  %v2075_v24 = vld [vmem:[%s63_s19 + $0x8] sm:$0xff]  ;;  %s580_s20 = scalar_lea.vmem [#allocation2], %s2369_s29  ;;  %p57_p0 = scmp.ge.s32.totalorder %s60_s28, 2  }
   0x6   : > { %v71_v16 = vunpack.c.0.s8 %v70_v8  ;;  %v64_v23 = vld [vmem:[%s63_s19] sm:$0xff]  ;;  %v267_v29 = vcombine.high %v2075_v24, %v2075_v24  ;;  %v2403_v30 = vld [vmem:[%s65_s2 + $0x8] sm:$0xff] }
   0x7   : > { %v2375_v10 = vsub.s32 0, %v73_v6  ;;  %v2377_v11 = vsub.s32 2, %v73_v6  ;;  %v2379_v12 = vsub.s32 3, %v73_v6  ;;  %v2381_v13 = vsub.s32 1, %v73_v6 }
   0x8   : > { %v2389_v17 = vsub.s32 5, %v73_v6  ;;  %v2391_v18 = vsub.s32 4, %v73_v6  ;;  %v2395_v21 = vsub.s32 7, %v73_v6  ;;  %v2397_v22 = vsub.s32 6, %v73_v6 }
   0x9   : > { %3373 = vst [vmem:[#allocation5_spill] sm:$0xff] %v2377_v11  ;;  %3374 = vst [vmem:[#allocation6_spill] sm:$0xff] %v2379_v12  ;;  %v150_v14 = vrot.slane %v66_v9, %v2377_v11  ;;  %v136_v15 = vrot.slane %v66_v9, %v2375_v10  ;;  %v157_v19 = vrot.slane %v66_v9, %v2379_v12 }
   0xa   : > { %3375 = vst [vmem:[#allocation7_spill] sm:$0xff] %v2381_v13  ;;  %3376 = vst [vmem:[#allocation8_spill] sm:$0xff] %v2389_v17  ;;  %v143_v20 = vrot.slane %v66_v9, %v2381_v13  ;;  %v2399_v25 = vsub.s32 %v71_v16, %v73_v6  ;;  %v68_v26 = vcombine.high %v64_v23, %v64_v23 }
   0xb   : > { %3377 = vst [vmem:[#allocation9_spill] sm:$0xff] %v2391_v18  ;;  %152 = vbcast.lane.b32.xlu1 %v150_v14, 256  ;;  %138 = vbcast.lane.b32.xlu0 %v136_v15, 256  ;;  %3378 = vst [vmem:[#allocation10_spill] sm:$0xff] %v2395_v21  ;;  %v171_v27 = vrot.slane %v66_v9, %v2389_v17  ;;  %v164_v28 = vrot.slane %v66_v9, %v2391_v18 }
   0xc   : > { %3379 = vst [vmem:[#allocation11_spill] sm:$0xff] %v2397_v22  ;;  %3380 = vst [vmem:[#allocation12_spill] sm:$0xff] %v2399_v25  ;;  %v75_v31 = vrot.slane %v64_v23, %v2399_v25  ;;  %v82_v32 = vrot.slane %v68_v26, %v2399_v25  ;;  %v274_v33 = vrot.slane %v2075_v24, %v2399_v25 }
   0xd   : > { %v185_v34 = vrot.slane %v66_v9, %v2395_v21  ;;  %v178_v35 = vrot.slane %v66_v9, %v2397_v22  ;;  %v342_v40 = vrot.slane %v2403_v30, %v2381_v13  ;;  %v335_v41 = vrot.slane %v2403_v30, %v2375_v10 }
   0xe   : > { %v91_v36 = vrot.slane %v75_v31, %v2399_v25  ;;  %v83_v37 = vcombine.high %v75_v31, %v75_v31  ;;  %v84_v38 = vcombine.high %v82_v32, %v82_v32  ;;  %v98_v39 = vrot.slane %v82_v32, %v2399_v25 }
   0xf   : > { %159 = vbcast.lane.b32.xlu1 %v157_v19, 256  ;;  %145 = vbcast.lane.b32.xlu0 %v143_v20, 256  ;;  %v282_v42 = vcombine.high %v274_v33, %v274_v33  ;;  %v281_v43 = vrot.slane %v267_v29, %v2399_v25  ;;  %v290_v58 = vrot.slane %v274_v33, %v2399_v25 }
  0x10   : > { %v113_v44 = vcombine.high %v91_v36, %v91_v36  ;;  %vm125_vm0 = vcmp.ne.f32.partialorder %v91_v36, 0.0  ;;  %v105_v45 = vrot.slane %v83_v37, %v2399_v25  ;;  %v112_v46 = vrot.slane %v84_v38, %v2399_v25 }
  0x11   : > { %v2420_v48 = vsel %vm125_vm0, 1, %v2256_v47  ;;  %vm129_vm1 = vcmp.ne.f32.partialorder %v98_v39, 0.0  ;;  %v114_v49 = vcombine.high %v98_v39, %v98_v39  ;;  %v304_v50 = vrot.slane %v282_v42, %v2399_v25 }
  0x12   : > { %vm127_vm2 = vcmp.ne.f32.partialorder %v113_v44, 0.0  ;;  %v200_v51 = vrot.slane %v2420_v48, %v2375_v10  ;;  %v115_v52 = vcombine.high %v105_v45, %v105_v45  ;;  %vm126_vm3 = vcmp.ne.f32.partialorder %v105_v45, 0.0 }
  0x13   : > { %173 = vbcast.lane.b32.xlu1 %v171_v27, 256  ;;  %166 = vbcast.lane.b32.xlu0 %v164_v28, 256  ;;  %v2426_v53 = vsel %vm127_vm2, 1, %v2256_v47  ;;  %v2429_v54 = vsel %vm126_vm3, 1, %v2256_v47  ;;  %vm130_vm4 = vcmp.ne.f32.partialorder %v112_v46, 0.0  ;;  %v2432_v55 = vsel %vm129_vm1, 1, %v2256_v47 }
  0x14   : > { %v208_v56 = vrot.slane %v2426_v53, %v2375_v10  ;;  %vm128_vm5 = vcmp.ne.f32.partialorder %v115_v52, 0.0  ;;  %v204_v57 = vrot.slane %v2429_v54, %v2375_v10  ;;  %v194_v60 = vsel %vm130_vm4, 1, %v2256_v47 }
  0x15   : > { %v2440_v59 = vsel %vm128_vm5, 1, %v2256_v47  ;;  %v216_v61 = vrot.slane %v2432_v55, %v2375_v10  ;;  %v116_v62 = vcombine.high %v112_v46, %v112_v46  ;;  %v356_v63 = vrot.slane %v2403_v30, %v2379_v12 }
  0x16   : > { %v212_v5 = vrot.slane %v2440_v59, %v2375_v10  ;;  %v220_v6 = vrot.slane %v194_v60, %v2375_v10  ;;  %vm131_vm7 = vcmp.ne.f32.partialorder %v114_v49, 0.0  ;;  %vm325_vm8 = vcmp.ne.f32.partialorder %v304_v50, 0.0 }
  0x17   : > { %187 = vbcast.lane.b32.xlu1 %v185_v34, 256  ;;  %180 = vbcast.lane.b32.xlu0 %v178_v35, 256  ;;  %vm132_vm6 = vcmp.ne.f32.partialorder %v116_v62, 0.0  ;;  %v283_v7 = vcombine.high %v281_v43, %v281_v43  ;;  %v349_v8 = vrot.slane %v2403_v30, %v2377_v11  ;;  %v195_v14 = vsel %vm131_vm7, 1, %v2256_v47 }
  0x18   : > { %v196_v9 = vsel %vm132_vm6, 1, %v2256_v47  ;;  %v297_v15 = vrot.slane %v281_v43, %v2399_v25  ;;  %v224_v19 = vrot.slane %v195_v14, %v2375_v10  ;;  %v2458_v20 = vsel %vm325_vm8, 1, %v2256_v47 }
  0x19   : > { %v228_v16 = vrot.slane %v196_v9, %v2375_v10  ;;  %vm324_vm9 = vcmp.ne.f32.partialorder %v290_v58, 0.0  ;;  %v403_v23 = vrot.slane %v2458_v20, %v2375_v10  ;;  %v314_v26 = vcombine.high %v304_v50, %v304_v50 }
  0x1a   : > { %v2463_v24 = vsel %vm324_vm9, 1, %v2256_v47  ;;  %v312_v27 = vcombine.high %v290_v58, %v290_v58  ;;  %v370_v28 = vrot.slane %v2403_v30, %v2389_v17  ;;  %v311_v31 = vrot.slane %v283_v7, %v2399_v25 }
  0x1b   : > { %344 = vbcast.lane.b32.xlu1 %v342_v40, 256  ;;  %337 = vbcast.lane.b32.xlu0 %v335_v41, 256  ;;  %v399_v29 = vrot.slane %v2463_v24, %v2375_v10  ;;  %v363_v32 = vrot.slane %v2403_v30, %v2391_v18  ;;  %vm327_vm10 = vcmp.ne.f32.partialorder %v314_v26, 0.0  ;;  %vm328_vm12 = vcmp.ne.f32.partialorder %v297_v15, 0.0 }
  0x1c   : > { %vm326_vm11 = vcmp.ne.f32.partialorder %v312_v27, 0.0  ;;  %v2473_v33 = vsel %vm327_vm10, 1, %v2256_v47  ;;  %vm329_vm13 = vcmp.ne.f32.partialorder %v311_v31, 0.0  ;;  %v2486_v38 = vsel %vm328_vm12, 1, %v2256_v47 }
  0x1d   : > { %v2476_v34 = vsel %vm326_vm11, 1, %v2256_v47  ;;  %v411_v35 = vrot.slane %v2473_v33, %v2375_v10  ;;  %v2483_v37 = vsel %vm329_vm13, 1, %v2256_v47  ;;  %v415_v40 = vrot.slane %v2486_v38, %v2375_v10 }
  0x1e   : > { %v407_v36 = vrot.slane %v2476_v34, %v2375_v10  ;;  %v419_v39 = vrot.slane %v2483_v37, %v2375_v10  ;;  %v315_v41 = vcombine.high %v311_v31, %v311_v31  ;;  %v313_v42 = vcombine.high %v297_v15, %v297_v15 }
  0x1f   : > { %358 = vbcast.lane.b32.xlu1 %v356_v63, 256  ;;  %351 = vbcast.lane.b32.xlu0 %v349_v8, 256  ;;  %v384_v43 = vrot.slane %v2403_v30, %v2395_v21  ;;  %v377_v44 = vrot.slane %v2403_v30, %v2397_v22  ;;  %vm2503_vm0 = vcmp.eq.s32.totalorder %v200_v51, 1  ;;  %vm2510_vm1 = vcmp.eq.s32.totalorder %v204_v57, 1 }
  0x20   : > { %vm331_vm14 = vcmp.ne.f32.partialorder %v315_v41, 0.0  ;;  %vm330_vm15 = vcmp.ne.f32.partialorder %v313_v42, 0.0  ;;  %vm2514_vm2 = vcmp.eq.s32.totalorder %v220_v6, 1  ;;  %vm2518_vm3 = vcmp.eq.s32.totalorder %v216_v61, 1 }
  0x21   : > { %v395_v45 = vsel %vm331_vm14, 1, %v2256_v47  ;;  %v394_v46 = vsel %vm330_vm15, 1, %v2256_v47  ;;  %vm245_vm4 = vcmask 125952   ;;  %vm2529_vm5 = vcmp.eq.s32.totalorder %v208_v56, 1 }
  0x22   : > { %v427_v49 = vrot.slane %v395_v45, %v2375_v10  ;;  %v423_v50 = vrot.slane %v394_v46, %v2375_v10  ;;  %vm2536_vm6 = vcmp.eq.s32.totalorder %v212_v5, 1  ;;  %vm2544_vm7 = vcmp.eq.s32.totalorder %v228_v16, 1 }
  0x23   : > { %372 = vbcast.lane.b32.xlu1 %v370_v28, 256  ;;  %365 = vbcast.lane.b32.xlu0 %v363_v32, 256  ;;  %vm2548_vm8 = vcmp.eq.s32.totalorder %v224_v19, 1  ;;  %vm2571_vm9 = vcmp.eq.s32.totalorder %v403_v23, 1  ;;  %vm2578_vm10 = vcmp.eq.s32.totalorder %v399_v29, 1  ;;  %vm433_vm11 = vcmp.eq.s32.totalorder %v419_v39, 1 }
  0x24   : > { %vm432_vm12 = vcmp.eq.s32.totalorder %v415_v40, 1  ;;  %vm2589_vm13 = vcmp.eq.s32.totalorder %v411_v35, 1  ;;  %vm2596_vm14 = vcmp.eq.s32.totalorder %v407_v36, 1  ;;  %vm2600_vm15 = vcmp.eq.s32.totalorder %v427_v49, 1 }
  0x27   : > { %386 = vbcast.lane.b32.xlu1 %v384_v43, 256  ;;  %379 = vbcast.lane.b32.xlu0 %v377_v44, 256 }
  0x7d   : > { %v153_v52 = vpop.permute.xlu1 %152  ;;  %v139_v55 = vpop.permute.xlu0 %138 }
  0x7e   : > { %v237_v48 = vsel %vm2503_vm0, %v139_v55, -inf  ;;  %v239_v15 = vsel %vm2529_vm5, %v153_v52, -inf  ;;  %vm2604_vm0 = vcmp.eq.s32.totalorder %v423_v50, 1 }
  0x7f   : > { %v246_v59 = vsel %vm245_vm4, %v237_v48, -inf  ;;  %v248_v38 = vsel %vm245_vm4, %v239_v15, -inf }
  0x81   : > { %v160_v30 = vpop.permute.xlu1 %159  ;;  %v146_v60 = vpop.permute.xlu0 %145 }
  0x82   : > { %v238_v51 = vsel %vm2510_vm1, %v146_v60, -inf  ;;  %v240_v16 = vsel %vm2536_vm6, %v160_v30, -inf  ;;  %vm501_vm1 = vcmask 1043456  }
  0x83   : > { %v247_v5 = vsel %vm245_vm4, %v238_v51, -inf  ;;  %v249_v41 = vsel %vm245_vm4, %v240_v16, -inf  ;;  %2146 = vmatprep.subr.msk.mxu0 %vm501_vm1, %v2361_v4 }
  0x84   : > { %2147 = vmatpush3.msk.msra.mxu0 %vm501_vm1, %v2361_v4  ;;  %v2664_v4 = vld [vmem:[%s3344_s7 + $0x10] sm:$0xff] (%p57_p0) }
  0x85   : > { %v174_v61 = vpop.permute.xlu1 %173  ;;  %v167_v6 = vpop.permute.xlu0 %166  ;;  %3411 = vst [vmem:[#allocation15_spill] sm:$0xff] (%p57_p0), %v2664_v4 }
  0x86   : > { %v242_v7 = vsel %vm2514_vm2, %v174_v61, -inf  ;;  %v241_v8 = vsel %vm2518_vm3, %v167_v6, -inf  ;;  %vm494_vm3 = vcmask 31744  }
  0x87   : > { %v252_v9 = vsel %vm245_vm4, %v242_v7, -inf  ;;  %v250_v14 = vsel %vm245_vm4, %v241_v8, -inf  ;;  %2156 = vmatprep.mubr.msk.f32.mxu1 (%p57_p0), %vm494_vm3, %v2351_v2  ;;  %v2659_v2 = vld [vmem:[%s3344_s7 + $0x8] sm:$0xff] (%p57_p0) }
  0x88   : > { %v253_v26 = vmax.f32 %v247_v5, %v252_v9  ;;  %v251_v27 = vmax.f32 %v246_v59, %v250_v14  ;;  %3410 = vst [vmem:[#allocation14_spill] sm:$0xff] (%p57_p0), %v2659_v2 }
  0x89   : > { %v188_v19 = vpop.permute.xlu1 %187  ;;  %v181_v28 = vpop.permute.xlu0 %180 }
  0x8a   : > { %v258_v31 = vmax.f32 %v251_v27, %v253_v26  ;;  %v244_v32 = vsel %vm2544_vm7, %v188_v19, -inf  ;;  %v243_v37 = vsel %vm2548_vm8, %v181_v28, -inf }
  0x8b   : > { %v256_v42 = vsel %vm245_vm4, %v244_v32, -inf  ;;  %v254_v43 = vsel %vm245_vm4, %v243_v37, -inf }
  0x8c   : > { %v257_v44 = vmax.f32 %v249_v41, %v256_v42  ;;  %v255_v45 = vmax.f32 %v248_v38, %v254_v43  ;;  %v588_v41 = vld [vmem:[%s3340_s3] sm:$0xf] (%p57_p0) }
  0x8d   : > { %v345_v46 = vpop.permute.xlu1 %344  ;;  %v338_v52 = vpop.permute.xlu0 %337  ;;  %2151 = vmatprep.subr.msk.mxu0 (%p57_p0), %vm501_vm1, %v588_v41  ;;  %2208 = vmatprep.subr.msk.mxu1 (%p57_p0), %vm501_vm1, %v588_v41 }
  0x8e   : > { %v259_v55 = vmax.f32 %v255_v45, %v257_v44  ;;  %v437_v63 = vsel %vm2571_vm9, %v345_v46, -inf  ;;  %v436_v20 = vsel %vm2578_vm10, %v338_v52, -inf  ;;  %2209 = vmatpush3.msk.msra.mxu1 (%p57_p0), %vm501_vm1, %v588_v41  ;;  %v2086_v44 = vld [vmem:[%s3341_s4] ss:$0 sm:$0xff] (%p57_p0) }
  0x8f   : > { %v445_v35 = vsel %vm245_vm4, %v437_v63, -inf  ;;  %v444_v34 = vsel %vm245_vm4, %v436_v20, -inf  ;;  %2157 = vmatmul.mubr.msk.f32.vlgmr.msra.gmra.mxu1 (%p57_p0), %vm494_vm3, %v2356_v3 }
  0x90   : > { %v260_v58 = vmax.f32 %v258_v31, %v259_v55 }
  0x91   : > { %v359_v47 = vpop.permute.xlu1 %358  ;;  %v352_v62 = vpop.permute.xlu0 %351 }
  0x92   : > { %v439_v57 = vsel %vm2589_vm13, %v359_v47, -inf  ;;  %v438_v49 = vsel %vm2596_vm14, %v352_v62, -inf }
  0x93   : > { %v447_v59 = vsel %vm245_vm4, %v439_v57, -inf  ;;  %v446_v5 = vsel %vm245_vm4, %v438_v49, -inf }
  0x95   : > { %v373_v29 = vpop.permute.xlu1 %372  ;;  %v366_v39 = vpop.permute.xlu0 %365 }
  0x96   : > { %v441_v40 = vsel %vm433_vm11, %v373_v29, -inf  ;;  %v440_v48 = vsel %vm432_vm12, %v366_v39, -inf }
  0x97   : > { %v450_v36 = vsel %vm245_vm4, %v441_v40, -inf  ;;  %v448_v54 = vsel %vm245_vm4, %v440_v48, -inf }
  0x98   : > { %v451_v61 = vmax.f32 %v445_v35, %v450_v36  ;;  %v449_v6 = vmax.f32 %v444_v34, %v448_v54 }
  0x99   : > { %v387_v50 = vpop.permute.xlu1 %386  ;;  %v380_v7 = vpop.permute.xlu0 %379 }
  0x9a   : > { %v456_v8 = vmax.f32 %v449_v6, %v451_v61  ;;  %v443_v53 = vsel %vm2600_vm15, %v387_v50, -inf  ;;  %v442_v56 = vsel %vm2604_vm0, %v380_v7, -inf }
  0x9b   : > { %v454_v9 = vsel %vm245_vm4, %v443_v53, -inf  ;;  %v452_v14 = vsel %vm245_vm4, %v442_v56, -inf  ;;  %vm581_vm4 = vcmask 261120  }
  0x9c   : > { %v455_v15 = vmax.f32 %v447_v59, %v454_v9  ;;  %v453_v16 = vmax.f32 %v446_v5, %v452_v14 }
  0x9e   : > { %v457_v26 = vmax.f32 %v453_v16, %v455_v15 }
  0xa0   : > { %v458_v27 = vmax.f32 %v456_v8, %v457_v26 }
  0xa2   : > { %v459_v19 = vmax.f32 %v260_v58, %v458_v27 }
  0xa4   : > { %vm460_vm2 = vcmp.eq.f32.partialorder %v459_v19, -inf }
  0xa5   : > { %v461_v28 = vsel %vm460_vm2, 0.0, %v459_v19 }
  0xa6   : > { %462 = vxpose.xlu0.b32.start.end [1/1] (short) (narrow) %v461_v28, 16 }
 0x122   : > { %v478_v31 = vpop.trf.xlu0 }
 0x123   : > { %2148 = vmatprep.mubr.msk.f32.mxu0 %vm494_vm3, %v478_v31 }
 0x126   : > { %v479_v32 = vpop.trf.xlu0 }
 0x127   : > { %2149 = vmatmul.mubr.msk.f32.vlgmr.msra.gmra.mxu0 %vm494_vm3, %v479_v32 }
 0x128   :  { %2153 = vmatprep.mubr.msk.f32.mxu0 (%p57_p0), %vm494_vm3, %v2341_v0  ;;  %2152 = vmatpush3.msk.msra.mxu0 (%p57_p0), %vm501_vm1, %v588_v41  ;;  %v2654_v0 = vld [vmem:[%s3344_s7] sm:$0xff] (%p57_p0) }
 0x129   :  { %3409 = vst [vmem:[#allocation13_spill] sm:$0xff] (%p57_p0), %v2654_v0 }
 0x12b   :  { %2154 = vmatmul.mubr.msk.f32.vlgmr.msra.gmra.mxu0 (%p57_p0), %vm494_vm3, %v2346_v1  ;;  %v2669_v1 = vld [vmem:[%s3344_s7 + $0x18] sm:$0xff] (%p57_p0) }
 0x12c   :  { %3412 = vst [vmem:[#allocation16_spill] sm:$0xff] (%p57_p0), %v2669_v1 }
 0x14f   :  { %v2158_v45 = vpop.f32.mrf.mxu1 (%p57_p0) }
 0x151   :  { %v682_v60 = vpop.f32.mrf.mxu1 (%p57_p0) }
 0x1e6   :  { %59 = sbr.rel (!%p57_p0) target bundleno = 3 (0x3), region = 104 }
 0x1e7   : > { %v2150_v37 = vpop.f32.mrf.mxu0 }
 0x1e8   : > { %583 = vst.msk [vmem:[%s580_s20 + $0x8] sm:$0xff] %vm581_vm4, %v2150_v37 }
 0x1e9   : > { %v571_v38 = vpop.f32.mrf.mxu0 }
 0x1ea   : > { %582 = vst.msk [vmem:[%s580_s20] sm:$0xff] %vm581_vm4, %v571_v38 }
 0x1eb   :  { %v2155_v43 = vpop.f32.mrf.mxu0 }
 0x1ed   :  { %v672_v30 = vpop.f32.mrf.mxu0 }
 0x1f1   :  { %v585_v3 = vld [vmem:[#allocation2 + $0x8] sm:$0xff]  ;;  %v587_v42 = vld [vmem:[#allocation2 + $0x18] sm:$0xff]  ;;  %v584_v46 = vld [vmem:[#allocation2] sm:$0xff] }
 0x1f2   :  { %v586_v52 = vld [vmem:[#allocation2 + $0x10] sm:$0xff]  ;;  %v692_v55 = vadd.f32 %v2155_v43, %v585_v3  ;;  %v694_v58 = vadd.f32 %v2158_v45, %v587_v42  ;;  %v691_v62 = vadd.f32 %v672_v30, %v584_v46 }
 0x1f3   :  { %v693_v63 = vadd.f32 %v682_v60, %v586_v52 }
 0x1f4   :  { %v703_v47 = vadd.f32 %v2086_v44, %v692_v55  ;;  %v705_v23 = vadd.f32 %v2086_v44, %v694_v58  ;;  %v702_v24 = vadd.f32 %v2086_v44, %v691_v62  ;;  %v710_v55 = vld [vmem:[%s3342_s5] sm:$0x1]  ;;  %s2705_s5 = smov 0  }
 0x1f5   :  { %v704_v29 = vadd.f32 %v2086_v44, %v693_v63 }
 0x1f6   :  { %v707_v20 = vmax.f32 %v703_v47, 0.0  ;;  %v706_v39 = vmax.f32 %v702_v24, 0.0  ;;  %v709_v51 = vmax.f32 %v705_v23, 0.0  ;;  %v2087_v47 = vld [vmem:[%s3343_s6] ss:$0 sm:$0xff] }
 0x1f7   :  { %v708_v40 = vmax.f32 %v704_v29, 0.0 }
 0x1f8   :  { %v714_v48 = vsel %vm581_vm4, %v707_v20, 0.0  ;;  %v713_v33 = vsel %vm581_vm4, %v706_v39, 0.0  ;;  %v718_v54 = vsel %vm581_vm4, %v709_v51, 0.0 }
 0x1f9   :  { %v715_v35 = vadd.f32 %v714_v48, %v713_v33  ;;  %v716_v34 = vsel %vm581_vm4, %v708_v40, 0.0 }
 0x1fb   :  { %v717_v36 = vadd.f32 %v716_v34, %v715_v35 }
 0x1fd   :  { %v719_v57 = vadd.f32 %v718_v54, %v717_v36 }
 0x1ff   :  { %v720_v49 = vrot.slane %v719_v57, 4 }
 0x201   :  { %v721_v61 = vadd.f32 %v720_v49, %v719_v57 }
 0x203   :  { %v722_v6 = vrot.slane %v721_v61, 2 }
 0x205   :  { %v723_v50 = vadd.f32 %v722_v6, %v721_v61 }
 0x207   :  { %v724_v7 = vrot.slane %v723_v50, 1 }
 0x209   :  { %v725_v8 = vadd.f32 %v724_v7, %v723_v50 }
 0x20b   :  { %v726_v53 = vmul.f32 0.03125, %v725_v8 }
 0x20d   :  { %v727_v56 = vsub.f32 %v706_v39, %v726_v53  ;;  %v728_v59 = vsub.f32 %v707_v20, %v726_v53  ;;  %v729_v5 = vsub.f32 %v708_v40, %v726_v53  ;;  %v730_v9 = vsub.f32 %v709_v51, %v726_v53 }
 0x20f   :  { %v731_v14 = vmul.f32 %v727_v56, %v727_v56  ;;  %v732_v15 = vmul.f32 %v728_v59, %v728_v59  ;;  %v733_v16 = vmul.f32 %v729_v5, %v729_v5  ;;  %v734_v26 = vmul.f32 %v730_v9, %v730_v9 }
 0x211   :  { %v735_v27 = vsel %vm581_vm4, %v731_v14, 0.0  ;;  %v736_v19 = vsel %vm581_vm4, %v732_v15, 0.0  ;;  %v738_v31 = vsel %vm581_vm4, %v733_v16, 0.0  ;;  %v740_v37 = vsel %vm581_vm4, %v734_v26, 0.0 }
 0x212   :  { %v737_v28 = vadd.f32 %v736_v19, %v735_v27 }
 0x214   :  { %v739_v32 = vadd.f32 %v738_v31, %v737_v28 }
 0x216   :  { %v741_v38 = vadd.f32 %v740_v37, %v739_v32 }
 0x218   :  { %v742_v41 = vrot.slane %v741_v38, 4 }
 0x21a   :  { %v743_v3 = vadd.f32 %v742_v41, %v741_v38 }
 0x21c   :  { %v744_v42 = vrot.slane %v743_v3, 2 }
 0x21e   :  { %v745_v43 = vadd.f32 %v744_v42, %v743_v3 }
 0x220   :  { %v746_v44 = vrot.slane %v745_v43, 1 }
 0x222   :  { %v747_v45 = vadd.f32 %v746_v44, %v745_v43 }
 0x224   :  { %v748_v46 = vmul.f32 0.03125, %v747_v45 }
 0x226   :  { %v749_v52 = vadd.f32 1e-05, %v748_v46 }
 0x228   :  { %2233 = vrsqrt.f32 %v749_v52 }
 0x235   :  { %v2234_v58 = vpop.eup %2233 }
 0x236   :  { %v751_v30 = vmul.f32 %v2234_v58, %v710_v55 }
 0x238   :  { %v756_v60 = vrot.slane %v751_v30, %v2375_v10 }
 0x23a   :  { %v758_v62 = vmul.f32 %v756_v60, %v727_v56  ;;  %v759_v63 = vmul.f32 %v756_v60, %v728_v59  ;;  %v760_v20 = vmul.f32 %v756_v60, %v729_v5  ;;  %v761_v23 = vmul.f32 %v756_v60, %v730_v9 }
 0x23c   :  { %v2689_v24 = vadd.f32 %v2087_v47, %v758_v62  ;;  %v2691_v29 = vadd.f32 %v2087_v47, %v759_v63  ;;  %v2693_v39 = vadd.f32 %v2087_v47, %v760_v20  ;;  %v2695_v40 = vadd.f32 %v2087_v47, %v761_v23 }
 0x23e   :  { %772 = vst.msk [vmem:[#allocation3] sm:$0xff] %vm581_vm4, %v2689_v24  ;;  %773 = vst.msk [vmem:[#allocation3 + $0x8] sm:$0xff] %vm581_vm4, %v2691_v29 }
 0x23f   :  { %774 = vst.msk [vmem:[#allocation3 + $0x10] sm:$0xff] %vm581_vm4, %v2693_v39  ;;  %775 = vst.msk [vmem:[#allocation3 + $0x18] sm:$0xff] %vm581_vm4, %v2695_v40 }
 0x240 LB: > { %v3413_v25 = vld [vmem:[#allocation12_spill] sm:$0xff]  ;;  %v3414_v22 = vld [vmem:[#allocation11_spill] sm:$0xff]  ;;  %v3415_v21 = vld [vmem:[#allocation10_spill] sm:$0xff]  ;;  %s2713_s6 = sshll.u32 %s2253_s5, 4  ;;  %v2257_v37 = vmov 0   ;;  %vm1090_vm14 = vcmask 130048   ;;  %s2253_s5 = sphi %s2705_s5, %s785_s5  }
 0x241   : > { %v3416_v18 = vld [vmem:[#allocation9_spill] sm:$0xff]  ;;  %v3417_v17 = vld [vmem:[#allocation8_spill] sm:$0xff]  ;;  %v3418_v13 = vld [vmem:[#allocation7_spill] sm:$0xff]  ;;  %s790_s17 = scalar_lea.vmem [#allocation3], %s2713_s6  ;;  %s788_s20 = scalar_lea.vmem %s3338_s1, %s2713_s6 }
 0x242   : > { %v3419_v12 = vld [vmem:[#allocation6_spill] sm:$0xff]  ;;  %v3420_v11 = vld [vmem:[#allocation5_spill] sm:$0xff]  ;;  %v3421_v4 = vld [vmem:[#allocation15_spill] sm:$0xff]  ;;  %s1639_s21 = scalar_lea.vmem [#allocation4], %s2713_s6  ;;  %s785_s5 = sadd.s32 1, %s2253_s5  }
 0x243   : > { %v3422_v2 = vld [vmem:[#allocation14_spill] sm:$0xff]  ;;  %v3423_v1 = vld [vmem:[#allocation16_spill] sm:$0xff]  ;;  %v3424_v0 = vld [vmem:[#allocation13_spill] sm:$0xff]  ;;  %p782_p1 = scmp.ge.s32.totalorder %s785_s5, 2  }
 0x244   : > { %2159 = vmatprep.subr.mxu0 %v3423_v1  ;;  %v2766_v5 = vld [vmem:[%s788_s20 + $0x8] sm:$0xff]  ;;  %v2768_v9 = vld [vmem:[%s788_s20] sm:$0xff] }
 0x245   : > { %2160 = vmatpush3.msra.mxu0 %v3423_v1  ;;  %v1164_v15 = vrot.slane %v2766_v5, %v3413_v25  ;;  %v800_v16 = vrot.slane %v2768_v9, %v3413_v25 }
 0x246   : > { %2161 = vmatprep.subr.mxu0 %v3421_v4  ;;  %v2718_v48 = vld [vmem:[%s790_s17 + $0x8] sm:$0xff]  ;;  %v2720_v51 = vld [vmem:[%s790_s17] sm:$0xff] }
 0x247   : > { %2162 = vmatpush3.msra.mxu0 %v3421_v4  ;;  %v1225_v33 = vrot.slane %v2718_v48, %v2375_v10  ;;  %v861_v35 = vrot.slane %v2720_v51, %v2375_v10  ;;  %v1244_v34 = vrot.slane %v2718_v48, %v3418_v13  ;;  %v880_v36 = vrot.slane %v2720_v51, %v3418_v13 }
 0x248   : > { %2163 = vmatprep.subr.mxu0 %v3422_v2  ;;  %v899_v54 = vrot.slane %v2720_v51, %v3420_v11  ;;  %v1263_v57 = vrot.slane %v2718_v48, %v3420_v11  ;;  %v918_v49 = vrot.slane %v2720_v51, %v3419_v12  ;;  %v1282_v61 = vrot.slane %v2718_v48, %v3419_v12 }
 0x249   : > { %2164 = vmatpush3.msra.mxu0 %v3422_v2  ;;  %1227 = vbcast.lane.b32.xlu1 %v1225_v33, 256  ;;  %v937_v6 = vrot.slane %v2720_v51, %v3416_v18  ;;  %v1301_v50 = vrot.slane %v2718_v48, %v3416_v18  ;;  %v956_v7 = vrot.slane %v2720_v51, %v3417_v17 }
 0x24a   : > { %2165 = vmatprep.subr.mxu0 %v3424_v0  ;;  %863 = vbcast.lane.b32.xlu0 %v861_v35, 256  ;;  %v1320_v8 = vrot.slane %v2718_v48, %v3417_v17  ;;  %v975_v53 = vrot.slane %v2720_v51, %v3414_v22  ;;  %v2754_v56 = vrot.slane %v2718_v48, %v3414_v22 }
 0x24b   : > { %2166 = vmatpush3.msra.mxu0 %v3424_v0  ;;  %v2759_v59 = vrot.slane %v2720_v51, %v3415_v21  ;;  %v2772_v14 = vrot.slane %v2718_v48, %v3415_v21  ;;  %v1172_v26 = vcombine.high %v1164_v15, %v1164_v15  ;;  %v808_v27 = vcombine.high %v800_v16, %v800_v16 }
 0x24c   : > { %v1180_v19 = vrot.slane %v1164_v15, %v3413_v25  ;;  %v816_v28 = vrot.slane %v800_v16, %v3413_v25 }
 0x24d   : > { %1246 = vbcast.lane.b32.xlu1 %v1244_v34, 256  ;;  %v2783_v31 = vrot.slane %v1172_v26, %v3413_v25  ;;  %v2786_v32 = vrot.slane %v808_v27, %v3413_v25 }
 0x24e   : > { %882 = vbcast.lane.b32.xlu0 %v880_v36, 256  ;;  %vm1214_vm5 = vcmp.ne.f32.partialorder %v1180_v19, 0.0  ;;  %vm850_vm6 = vcmp.ne.f32.partialorder %v816_v28, 0.0  ;;  %v838_v43 = vcombine.high %v816_v28, %v816_v28  ;;  %v1202_v47 = vcombine.high %v1180_v19, %v1180_v19 }
 0x24f   : > { %vm1215_vm7 = vcmp.ne.f32.partialorder %v2783_v31, 0.0  ;;  %vm851_vm8 = vcmp.ne.f32.partialorder %v2786_v32, 0.0  ;;  %v1374_v38 = vsel %vm1214_vm5, 1, %v2257_v37  ;;  %v1010_v41 = vsel %vm850_vm6, 1, %v2257_v37 }
 0x250   : > { %v1375_v3 = vsel %vm1215_vm7, 1, %v2257_v37  ;;  %v1011_v42 = vsel %vm851_vm8, 1, %v2257_v37  ;;  %v1385_v44 = vrot.slane %v1374_v38, %v2375_v10  ;;  %v1021_v45 = vrot.slane %v1010_v41, %v2375_v10 }
 0x251   : > { %886 = vbcast.lane.b32.xlu1 %v880_v36, 264  ;;  %v1389_v46 = vrot.slane %v1375_v3, %v2375_v10  ;;  %v1025_v52 = vrot.slane %v1011_v42, %v2375_v10  ;;  %vm852_vm9 = vcmp.ne.f32.partialorder %v838_v43, 0.0  ;;  %vm1216_vm15 = vcmp.ne.f32.partialorder %v1202_v47, 0.0 }
 0x252   : > { %867 = vbcast.lane.b32.xlu0 %v861_v35, 264  ;;  %vm2801_vm10 = vcmp.eq.s32.totalorder %v1385_v44, 1  ;;  %vm2805_vm11 = vcmp.eq.s32.totalorder %v1021_v45, 1  ;;  %v1012_v20 = vsel %vm852_vm9, 1, %v2257_v37  ;;  %v840_v15 = vcombine.high %v2786_v32, %v2786_v32 }
 0x253   : > { %vm2810_vm12 = vcmp.eq.s32.totalorder %v1389_v46, 1  ;;  %vm2814_vm13 = vcmp.eq.s32.totalorder %v1025_v52, 1 }
 0x254   : > { %vm853_vm1 = vcmp.ne.f32.partialorder %v840_v15, 0.0 }
 0x255   : > { %1231 = vbcast.lane.b32.xlu1 %v1225_v33, 264  ;;  %v1013_v44 = vsel %vm853_vm1, 1, %v2257_v37 }
 0x256   : > { %901 = vbcast.lane.b32.xlu0 %v899_v54, 256 }
 0x259   : > { %1265 = vbcast.lane.b32.xlu1 %v1263_v57, 256 }
 0x25a   : > { %1250 = vbcast.lane.b32.xlu0 %v1244_v34, 264 }
 0x25d   : > { %890 = vbcast.lane.b32.xlu1 %v880_v36, 272 }
 0x25e   : > { %871 = vbcast.lane.b32.xlu0 %v861_v35, 272 }
 0x261   : > { %920 = vbcast.lane.b32.xlu1 %v918_v49, 256 }
 0x262   : > { %905 = vbcast.lane.b32.xlu0 %v899_v54, 264 }
 0x265   : > { %1254 = vbcast.lane.b32.xlu1 %v1244_v34, 272 }
 0x266   : > { %1235 = vbcast.lane.b32.xlu0 %v1225_v33, 272 }
 0x269   : > { %1284 = vbcast.lane.b32.xlu1 %v1282_v61, 256 }
 0x26a   : > { %1269 = vbcast.lane.b32.xlu0 %v1263_v57, 264 }
 0x26d   : > { %894 = vbcast.lane.b32.xlu1 %v880_v36, 280  ;;  %v1029_v36 = vrot.slane %v1012_v20, %v2375_v10 }
 0x26e   : > { %875 = vbcast.lane.b32.xlu0 %v861_v35, 280 }
 0x26f   : > { %vm2845_vm0 = vcmp.eq.s32.totalorder %v1029_v36, 1 }
 0x271   : > { %924 = vbcast.lane.b32.xlu1 %v918_v49, 264 }
 0x272   : > { %909 = vbcast.lane.b32.xlu0 %v899_v54, 272 }
 0x275   : > { %1239 = vbcast.lane.b32.xlu1 %v1225_v33, 280 }
 0x276   : > { %939 = vbcast.lane.b32.xlu0 %v937_v6, 256 }
 0x279   : > { %1273 = vbcast.lane.b32.xlu1 %v1263_v57, 272 }
 0x27a   : > { %1258 = vbcast.lane.b32.xlu0 %v1244_v34, 280 }
 0x27d   : > { %1303 = vbcast.lane.b32.xlu1 %v1301_v50, 256 }
 0x27e   : > { %1288 = vbcast.lane.b32.xlu0 %v1282_v61, 264 }
 0x281   : > { %928 = vbcast.lane.b32.xlu1 %v918_v49, 272 }
 0x282   : > { %913 = vbcast.lane.b32.xlu0 %v899_v54, 280 }
 0x285   : > { %958 = vbcast.lane.b32.xlu1 %v956_v7, 256 }
 0x286   : > { %943 = vbcast.lane.b32.xlu0 %v937_v6, 264 }
 0x289   : > { %1292 = vbcast.lane.b32.xlu1 %v1282_v61, 272 }
 0x28a   : > { %1277 = vbcast.lane.b32.xlu0 %v1263_v57, 280 }
 0x28d   : > { %1322 = vbcast.lane.b32.xlu1 %v1320_v8, 256 }
 0x28e   : > { %1307 = vbcast.lane.b32.xlu0 %v1301_v50, 264 }
 0x291   : > { %947 = vbcast.lane.b32.xlu1 %v937_v6, 272 }
 0x292   : > { %932 = vbcast.lane.b32.xlu0 %v918_v49, 280 }
 0x295   : > { %977 = vbcast.lane.b32.xlu1 %v975_v53, 256 }
 0x296   : > { %962 = vbcast.lane.b32.xlu0 %v956_v7, 264 }
 0x299   : > { %1311 = vbcast.lane.b32.xlu1 %v1301_v50, 272 }
 0x29a   : > { %1296 = vbcast.lane.b32.xlu0 %v1282_v61, 280 }
 0x29d   : > { %1341 = vbcast.lane.b32.xlu1 %v2754_v56, 256 }
 0x29e   : > { %1326 = vbcast.lane.b32.xlu0 %v1320_v8, 264 }
 0x2a1   : > { %966 = vbcast.lane.b32.xlu1 %v956_v7, 272 }
 0x2a2   : > { %951 = vbcast.lane.b32.xlu0 %v937_v6, 280 }
 0x2a5   : > { %996 = vbcast.lane.b32.xlu1 %v2759_v59, 256 }
 0x2a6   : > { %981 = vbcast.lane.b32.xlu0 %v975_v53, 264 }
 0x2a9   : > { %1330 = vbcast.lane.b32.xlu1 %v1320_v8, 272 }
 0x2aa   : > { %1315 = vbcast.lane.b32.xlu0 %v1301_v50, 280 }
 0x2ad   : > { %1360 = vbcast.lane.b32.xlu1 %v2772_v14, 256 }
 0x2ae   : > { %1345 = vbcast.lane.b32.xlu0 %v2754_v56, 264 }
 0x2b1   : > { %985 = vbcast.lane.b32.xlu1 %v975_v53, 272 }
 0x2b2   : > { %970 = vbcast.lane.b32.xlu0 %v956_v7, 280  ;;  %v1376_v7 = vsel %vm1216_vm15, 1, %v2257_v37 }
 0x2b3   : > { %v1393_v28 = vrot.slane %v1376_v7, %v2375_v10 }
 0x2b5   : > { %1334 = vbcast.lane.b32.xlu1 %v1320_v8, 280  ;;  %vm2853_vm2 = vcmp.eq.s32.totalorder %v1393_v28, 1 }
 0x2b6   : > { %1000 = vbcast.lane.b32.xlu0 %v2759_v59, 264 }
 0x2b9   : > { %1364 = vbcast.lane.b32.xlu1 %v2772_v14, 264 }
 0x2ba   : > { %1349 = vbcast.lane.b32.xlu0 %v2754_v56, 272 }
 0x2bb   : > { %v1228_v55 = vpop.permute.xlu1 %1227 }
 0x2bc   : > { %v864_v30 = vpop.permute.xlu0 %863  ;;  %v1422_v23 = vsel %vm2801_vm10, %v1228_v55, -inf }
 0x2bd   : > { %1004 = vbcast.lane.b32.xlu1 %v2759_v59, 272  ;;  %v1058_v48 = vsel %vm2805_vm11, %v864_v30, -inf  ;;  %v1454_v54 = vsel %vm1090_vm14, %v1422_v23, -inf  ;;  %v1033_v23 = vrot.slane %v1013_v44, %v2375_v10 }
 0x2be   : > { %989 = vbcast.lane.b32.xlu0 %v975_v53, 280  ;;  %v1091_v57 = vsel %vm1090_vm14, %v1058_v48, -inf }
 0x2bf   : > { %v1247_v51 = vpop.permute.xlu1 %1246  ;;  %vm2878_vm3 = vcmp.eq.s32.totalorder %v1033_v23, 1 }
 0x2c0   : > { %v883_v33 = vpop.permute.xlu0 %882  ;;  %v1426_v35 = vsel %vm2810_vm12, %v1247_v51, -inf }
 0x2c1   : > { %v1062_v34 = vsel %vm2814_vm13, %v883_v33, -inf  ;;  %v1455_v49 = vsel %vm1090_vm14, %v1426_v35, -inf  ;;  %1368 = vbcast.lane.b32.xlu1 %v2772_v14, 272 }
 0x2c2   : > { %v1092_v61 = vsel %vm1090_vm14, %v1062_v34, -inf  ;;  %1353 = vbcast.lane.b32.xlu0 %v2754_v56, 280  ;;  %v1456_v6 = vmax.f32 %v1454_v54, %v1455_v49 }
 0x2c3   : > { %v1093_v50 = vmax.f32 %v1091_v57, %v1092_v61  ;;  %v887_v8 = vpop.permute.xlu1 %886 }
 0x2c4   : > { %v868_v53 = vpop.permute.xlu0 %867  ;;  %v1063_v16 = vsel %vm2814_vm13, %v887_v8, -inf }
 0x2c5   : > { %v1059_v26 = vsel %vm2805_vm11, %v868_v53, -inf  ;;  %v1107_v27 = vsel %vm1090_vm14, %v1063_v16, -inf  ;;  %1372 = vbcast.lane.b32.xlu1 %v2772_v14, 280 }
 0x2c6   : > { %v1106_v19 = vsel %vm1090_vm14, %v1059_v26, -inf  ;;  %1008 = vbcast.lane.b32.xlu0 %v2759_v59, 280 }
 0x2c7   : > { %v1108_v32 = vmax.f32 %v1106_v19, %v1107_v27  ;;  %v1232_v38 = vpop.permute.xlu1 %1231 }
 0x2c8   : > { %v902_v41 = vpop.permute.xlu0 %901  ;;  %v1423_v59 = vsel %vm2801_vm10, %v1232_v38, -inf }
 0x2c9   : > { %v1066_v3 = vsel %vm2845_vm0, %v902_v41, -inf  ;;  %v1469_v30 = vsel %vm1090_vm14, %v1423_v59, -inf }
 0x2ca   : > { %v1094_v42 = vsel %vm1090_vm14, %v1066_v3, -inf }
 0x2cb   : > { %v2859_v14 = vmax.f32 %v1093_v50, %v1094_v42  ;;  %v1266_v45 = vpop.permute.xlu1 %1265 }
 0x2cc   : > { %v1251_v46 = vpop.permute.xlu0 %1250  ;;  %v1430_v52 = vsel %vm2853_vm2, %v1266_v45, -inf }
 0x2cd   : > { %v1427_v55 = vsel %vm2810_vm12, %v1251_v46, -inf  ;;  %v1457_v47 = vsel %vm1090_vm14, %v1430_v52, -inf }
 0x2ce   : > { %v1470_v20 = vsel %vm1090_vm14, %v1427_v55, -inf  ;;  %v2870_v48 = vmax.f32 %v1456_v6, %v1457_v47 }
 0x2cf   : > { %v1471_v51 = vmax.f32 %v1469_v30, %v1470_v20  ;;  %v891_v33 = vpop.permute.xlu1 %890 }
 0x2d0   : > { %v872_v35 = vpop.permute.xlu0 %871  ;;  %v1064_v34 = vsel %vm2814_vm13, %v891_v33, -inf }
 0x2d1   : > { %v1060_v36 = vsel %vm2805_vm11, %v872_v35, -inf  ;;  %v1122_v54 = vsel %vm1090_vm14, %v1064_v34, -inf }
 0x2d2   : > { %v1121_v57 = vsel %vm1090_vm14, %v1060_v36, -inf }
 0x2d3   : > { %v1123_v61 = vmax.f32 %v1121_v57, %v1122_v54  ;;  %v921_v6 = vpop.permute.xlu1 %920 }
 0x2d4   : > { %v906_v50 = vpop.permute.xlu0 %905  ;;  %v1070_v7 = vsel %vm2878_vm3, %v921_v6, -inf }
 0x2d5   : > { %v1067_v8 = vsel %vm2845_vm0, %v906_v50, -inf  ;;  %v2887_v53 = vsel %vm1090_vm14, %v1070_v7, -inf }
 0x2d6   : > { %v1109_v15 = vsel %vm1090_vm14, %v1067_v8, -inf }
 0x2d7   : > { %v2892_v26 = vmax.f32 %v1108_v32, %v1109_v15  ;;  %v1255_v27 = vpop.permute.xlu1 %1254 }
 0x2d8   : > { %v1236_v19 = vpop.permute.xlu0 %1235  ;;  %v1428_v28 = vsel %vm2810_vm12, %v1255_v27, -inf }
 0x2d9   : > { %v1424_v38 = vsel %vm2801_vm10, %v1236_v19, -inf  ;;  %v2899_v41 = vsel %vm1090_vm14, %v1428_v28, -inf }
 0x2da   : > { %v2902_v3 = vsel %vm1090_vm14, %v1424_v38, -inf }
 0x2db   : > { %v2906_v59 = vpop.permute.xlu1 %1284  ;;  %v3458_v56 = vmax.f32 %v2902_v3, %v2899_v41 }
 0x2dc   : > { %v1270_v32 = vpop.permute.xlu0 %1269 }
 0x2dd   : > { %v1431_v44 = vsel %vm2853_vm2, %v1270_v32, -inf }
 0x2de   : > { %v1472_v45 = vsel %vm1090_vm14, %v1431_v44, -inf }
 0x2df   : > { %v2911_v46 = vmax.f32 %v1471_v51, %v1472_v45  ;;  %v895_v52 = vpop.permute.xlu1 %894 }
 0x2e0   : > { %v876_v55 = vpop.permute.xlu0 %875  ;;  %v1065_v30 = vsel %vm2814_vm13, %v895_v52, -inf }
 0x2e1   : > { %v1061_v47 = vsel %vm2805_vm11, %v876_v55, -inf  ;;  %v2918_v20 = vsel %vm1090_vm14, %v1065_v30, -inf  ;;  %v793_v30 = vcombine.high %v2768_v9, %v2768_v9 }
 0x2e2   : > { %v2921_v23 = vsel %vm1090_vm14, %v1061_v47, -inf  ;;  %v1157_v47 = vcombine.high %v2766_v5, %v2766_v5 }
 0x2e3   : > { %v925_v35 = vpop.permute.xlu1 %924 }
 0x2e4   : > { %v910_v51 = vpop.permute.xlu0 %909  ;;  %v1071_v34 = vsel %vm2878_vm3, %v925_v35, -inf }
 0x2e5   : > { %v1068_v63 = vsel %vm2845_vm0, %v910_v51, -inf  ;;  %v2930_v60 = vsel %vm1090_vm14, %v1071_v34, -inf  ;;  %v807_v34 = vrot.slane %v793_v30, %v3413_v25 }
 0x2e6   : > { %v1124_v36 = vsel %vm1090_vm14, %v1068_v63, -inf  ;;  %v1171_v63 = vrot.slane %v1157_v47, %v3413_v25 }
 0x2e7   : > { %v2935_v57 = vmax.f32 %v1123_v61, %v1124_v36  ;;  %v1240_v6 = vpop.permute.xlu1 %1239  ;;  %v1204_v36 = vcombine.high %v2783_v31, %v2783_v31  ;;  %v823_v9 = vrot.slane %v807_v34, %v3413_v25 }
 0x2e8   : > { %v2937_v50 = vpop.permute.xlu0 %939  ;;  %v1425_v7 = vsel %vm2801_vm10, %v1240_v6, -inf  ;;  %v809_v6 = vcombine.high %v807_v34, %v807_v34  ;;  %v1187_v5 = vrot.slane %v1171_v63, %v3413_v25 }
 0x2e9   : > { %v2946_v19 = vsel %vm1090_vm14, %v1425_v7, -inf  ;;  %v1173_v7 = vcombine.high %v1171_v63, %v1171_v63  ;;  %vm1217_vm5 = vcmp.ne.f32.partialorder %v1204_v36, 0.0  ;;  %vm854_vm6 = vcmp.ne.f32.partialorder %v823_v9, 0.0 }
 0x2ea   : > { %v837_v61 = vrot.slane %v809_v6, %v3413_v25  ;;  %vm1218_vm7 = vcmp.ne.f32.partialorder %v1187_v5, 0.0  ;;  %v839_v31 = vcombine.high %v823_v9, %v823_v9  ;;  %v1203_v33 = vcombine.high %v1187_v5, %v1187_v5 }
 0x2eb   : > { %v2941_v8 = vpop.permute.xlu1 %1273  ;;  %v1201_v30 = vrot.slane %v1173_v7, %v3413_v25  ;;  %v1377_v42 = vsel %vm1217_vm5, 1, %v2257_v37  ;;  %v1014_v16 = vsel %vm854_vm6, 1, %v2257_v37  ;;  %v1378_v6 = vsel %vm1218_vm7, 1, %v2257_v37 }
 0x2ec   : > { %v1259_v15 = vpop.permute.xlu0 %1258  ;;  %vm855_vm8 = vcmp.ne.f32.partialorder %v837_v61, 0.0  ;;  %v841_v36 = vcombine.high %v837_v61, %v837_v61  ;;  %v1397_v7 = vrot.slane %v1377_v42, %v2375_v10  ;;  %vm856_vm10 = vcmp.ne.f32.partialorder %v839_v31, 0.0 }
 0x2ed   : > { %v1429_v27 = vsel %vm2810_vm12, %v1259_v15, -inf  ;;  %vm1219_vm9 = vcmp.ne.f32.partialorder %v1201_v30, 0.0  ;;  %vm1220_vm11 = vcmp.ne.f32.partialorder %v1203_v33, 0.0  ;;  %v1037_v9 = vrot.slane %v1014_v16, %v2375_v10 }
 0x2ee   : > { %v2949_v28 = vsel %vm1090_vm14, %v1429_v27, -inf  ;;  %v1015_v5 = vsel %vm855_vm8, 1, %v2257_v37  ;;  %v1379_v0 = vsel %vm1219_vm9, 1, %v2257_v37  ;;  %v1401_v1 = vrot.slane %v1378_v6, %v2375_v10 }
 0x2ef   : > { %v2953_v38 = vpop.permute.xlu1 %1303  ;;  %vm857_vm12 = vcmp.ne.f32.partialorder %v841_v36, 0.0  ;;  %v1205_v11 = vcombine.high %v1201_v30, %v1201_v30  ;;  %v1016_v61 = vsel %vm856_vm10, 1, %v2257_v37  ;;  %v1380_v12 = vsel %vm1220_vm11, 1, %v2257_v37 }
 0x2f0   : > { %v2955_v32 = vpop.permute.xlu0 %1288  ;;  %vm3009_vm13 = vcmp.eq.s32.totalorder %v1397_v7, 1  ;;  %v1041_v16 = vrot.slane %v1015_v5, %v2375_v10  ;;  %v1405_v33 = vrot.slane %v1379_v0, %v2375_v10  ;;  %vm3015_vm15 = vcmp.eq.s32.totalorder %v1037_v9, 1 }
 0x2f1   : > { %v1017_v6 = vsel %vm857_vm12, 1, %v2257_v37  ;;  %vm3020_vm1 = vcmp.eq.s32.totalorder %v1401_v1, 1  ;;  %v1045_v36 = vrot.slane %v1016_v61, %v2375_v10  ;;  %v1409_v7 = vrot.slane %v1380_v12, %v2375_v10 }
 0x2f2   : > { %vm1221_vm5 = vcmp.ne.f32.partialorder %v1205_v11, 0.0  ;;  %v1434_v0 = vsel %vm3009_vm13, %v2906_v59, -inf  ;;  %v1074_v1 = vsel %vm3015_vm15, %v2937_v50, -inf  ;;  %vm3036_vm6 = vcmp.eq.s32.totalorder %v1041_v16, 1 }
 0x2f3   : > { %v2957_v58 = vpop.permute.xlu1 %928  ;;  %vm3040_vm7 = vcmp.eq.s32.totalorder %v1405_v33, 1  ;;  %v1049_v12 = vrot.slane %v1017_v6, %v2375_v10  ;;  %v1438_v11 = vsel %vm3020_vm1, %v2953_v38, -inf  ;;  %v1381_v59 = vsel %vm1221_vm5, 1, %v2257_v37 }
 0x2f4   : > { %v2959_v44 = vpop.permute.xlu0 %913  ;;  %v1459_v61 = vsel %vm1090_vm14, %v1434_v0, -inf  ;;  %vm3050_vm8 = vcmp.eq.s32.totalorder %v1045_v36, 1  ;;  %vm3054_vm9 = vcmp.eq.s32.totalorder %v1409_v7, 1  ;;  %v1098_v6 = vsel %vm1090_vm14, %v1074_v1, -inf }
 0x2f5   : > { %v1432_v36 = vsel %vm2853_vm2, %v2941_v8, -inf  ;;  %v1461_v7 = vsel %vm1090_vm14, %v1438_v11, -inf  ;;  %vm3071_vm10 = vcmp.eq.s32.totalorder %v1049_v12, 1  ;;  %v1413_v1 = vrot.slane %v1381_v59, %v2375_v10 }
 0x2f6   : > { %v1460_v21 = vmax.f32 %v2870_v48, %v1459_v61  ;;  %v3455_v8 = vmax.f32 %v2859_v14, %v2887_v53  ;;  %v1435_v12 = vsel %vm3009_vm13, %v2955_v32, -inf  ;;  %v1069_v53 = vsel %vm2845_vm0, %v2959_v44, -inf }
 0x2f7   : > { %v2961_v45 = vpop.permute.xlu1 %958  ;;  %vm3105_vm11 = vcmp.eq.s32.totalorder %v1413_v1, 1 }
 0x2f8   : > { %v2963_v62 = vpop.permute.xlu0 %943  ;;  %v1078_v38 = vsel %vm3036_vm6, %v2961_v45, -inf  ;;  %v1099_v22 = vmax.f32 %v3455_v8, %v1098_v6  ;;  %v1462_v25 = vmax.f32 %v1460_v21, %v1461_v7  ;;  %v1474_v21 = vsel %vm1090_vm14, %v1435_v12, -inf }
 0x2f9   : > { %v1100_v11 = vsel %vm1090_vm14, %v1078_v38, -inf  ;;  %v1475_v41 = vmax.f32 %v2911_v46, %v1474_v21  ;;  %v3459_v46 = vmax.f32 %v2921_v23, %v2918_v20 }
 0x2fb   : > { %v2965_v52 = vpop.permute.xlu1 %1292 }
 0x2fc   : > { %v2967_v55 = vpop.permute.xlu0 %1277  ;;  %v1436_v7 = vsel %vm3009_vm13, %v2965_v52, -inf }
 0x2fd   : > { %v1433_v12 = vsel %vm2853_vm2, %v2967_v55, -inf }
 0x2ff   : > { %v2973_v35 = vpop.permute.xlu1 %1322 }
 0x300   : > { %v2975_v51 = vpop.permute.xlu0 %1307  ;;  %v1442_v37 = vsel %vm3040_vm7, %v2973_v35, -inf }
 0x301   : > { %v1463_v59 = vsel %vm1090_vm14, %v1442_v37, -inf  ;;  %v1101_v37 = vmax.f32 %v1099_v22, %v1100_v11  ;;  %v1489_v11 = vsel %vm1090_vm14, %v1436_v7, -inf }
 0x303   : > { %v2981_v15 = vpop.permute.xlu1 %947 }
 0x304   : > { %v2983_v27 = vpop.permute.xlu0 %932  ;;  %v1076_v43 = vsel %vm3015_vm15, %v2981_v15, -inf }
 0x305   : > { %v1073_v20 = vsel %vm2878_vm3, %v2983_v27, -inf }
 0x307   : > { %v2989_v54 = vpop.permute.xlu1 %977 }
 0x308   : > { %v2991_v47 = vpop.permute.xlu0 %962  ;;  %v1082_v45 = vsel %vm3050_vm8, %v2989_v54, -inf  ;;  %v1487_v54 = vsel %vm1090_vm14, %v1432_v36, -inf }
 0x309   : > { %v1102_v32 = vsel %vm1090_vm14, %v1082_v45, -inf  ;;  %v3116_v44 = vmax.f32 %v3458_v56, %v1487_v54  ;;  %v1079_v55 = vsel %vm3036_vm6, %v2991_v47, -inf  ;;  %v1502_v47 = vsel %vm1090_vm14, %v1433_v12, -inf }
 0x30a   : > { %v1103_v8 = vmax.f32 %v1101_v37, %v1102_v32  ;;  %v1115_v49 = vsel %vm1090_vm14, %v1079_v55, -inf }
 0x30b   : > { %v2995_v34 = vpop.permute.xlu1 %1311  ;;  %v1490_v21 = vmax.f32 %v3116_v44, %v1489_v11 }
 0x30c   : > { %v2997_v63 = vpop.permute.xlu0 %1296 }
 0x30d   : > { %v1437_v7 = vsel %vm3009_vm13, %v2997_v63, -inf }
 0x30f   : > { %v1342_v2 = vpop.permute.xlu1 %1341 }
 0x310   : > { %v3005_v4 = vpop.permute.xlu0 %1326  ;;  %v1446_v35 = vsel %vm3054_vm9, %v1342_v2, -inf  ;;  %v1072_v2 = vsel %vm2878_vm3, %v2957_v58, -inf  ;;  %v1075_v58 = vsel %vm3015_vm15, %v2963_v62, -inf }
 0x311   : > { %v1465_v6 = vsel %vm1090_vm14, %v1446_v35, -inf  ;;  %v1126_v36 = vsel %vm1090_vm14, %v1072_v2, -inf  ;;  %v1139_v35 = vsel %vm1090_vm14, %v1069_v53, -inf  ;;  %v1113_v3 = vsel %vm1090_vm14, %v1075_v58, -inf }
 0x312   : > { %v3140_v53 = vmax.f32 %v3459_v46, %v1139_v35  ;;  %v1443_v23 = vsel %vm3040_vm7, %v3005_v4, -inf  ;;  %v1141_v4 = vsel %vm1090_vm14, %v1073_v20, -inf  ;;  %v1440_v58 = vsel %vm3020_vm1, %v2995_v34, -inf }
 0x313   : > { %v3026_v13 = vpop.permute.xlu1 %966 }
 0x314   : > { %v3028_v17 = vpop.permute.xlu0 %951  ;;  %v1080_v63 = vsel %vm3036_vm6, %v3026_v13, -inf }
 0x317   : > { %v997_v33 = vpop.permute.xlu1 %996 }
 0x318   : > { %v3058_v18 = vpop.permute.xlu0 %981  ;;  %v1086_v14 = vsel %vm3071_vm10, %v997_v33, -inf  ;;  %v1464_v33 = vmax.f32 %v1462_v25, %v1463_v59  ;;  %v1439_v59 = vsel %vm3020_vm1, %v2975_v51, -inf  ;;  %v3460_v51 = vmax.f32 %v2892_v26, %v2930_v60 }
 0x319   : > { %v1104_v1 = vsel %vm1090_vm14, %v1086_v14, -inf  ;;  %v1127_v14 = vmax.f32 %v2935_v57, %v1126_v36  ;;  %v1476_v37 = vsel %vm1090_vm14, %v1439_v59, -inf  ;;  %v1083_v26 = vsel %vm3050_vm8, %v3058_v18, -inf }
 0x31a   : > { %v1466_v62 = vmax.f32 %v1464_v33, %v1465_v6  ;;  %v1105_v54 = vmax.f32 %v1103_v8, %v1104_v1  ;;  %v1114_v57 = vmax.f32 %v3460_v51, %v1113_v3  ;;  %v1128_v60 = vsel %vm1090_vm14, %v1076_v43, -inf }
 0x31b   : > { %v3090_v48 = vpop.permute.xlu1 %1330  ;;  %v1478_v33 = vsel %vm1090_vm14, %v1443_v23, -inf  ;;  %v1477_v18 = vmax.f32 %v1475_v41, %v1476_v37  ;;  %v1117_v1 = vsel %vm1090_vm14, %v1083_v26, -inf  ;;  %v1129_v35 = vmax.f32 %v1127_v14, %v1128_v60 }
 0x31c   : > { %v3092_v61 = vpop.permute.xlu0 %1315  ;;  %v1116_v8 = vmax.f32 %v1114_v57, %v1115_v49  ;;  %v1491_v41 = vsel %vm1090_vm14, %v1440_v58, -inf  ;;  %v1504_v3 = vsel %vm1090_vm14, %v1437_v7, -inf  ;;  %v1444_v59 = vsel %vm3040_vm7, %v3090_v48, -inf }
 0x31d   : > { %v1479_v42 = vmax.f32 %v1477_v18, %v1478_v33  ;;  %v1492_v14 = vmax.f32 %v1490_v21, %v1491_v41  ;;  %v1493_v55 = vsel %vm1090_vm14, %v1444_v59, -inf }
 0x31f   : > { %v1361_v45 = vpop.permute.xlu1 %1360  ;;  %v1494_v9 = vmax.f32 %v1492_v14, %v1493_v55  ;;  %v1649_v14 = vld [vmem:[%s3345_s8 + $0x18] sm:$0xff] (%p782_p1)  ;;  %v2099_v55 = vld [vmem:[%s3346_s9] ss:$0 sm:$0xff] (%p782_p1) }
 0x320   : > { %v1346_v22 = vpop.permute.xlu0 %1345  ;;  %v1450_v25 = vsel %vm3105_vm11, %v1361_v45, -inf  ;;  %2170 = vmatprep.subr.mxu0 (%p782_p1), %v1649_v14 }
 0x321   : > { %v1467_v52 = vsel %vm1090_vm14, %v1450_v25, -inf  ;;  %v1447_v27 = vsel %vm3054_vm9, %v1346_v22, -inf  ;;  %v3461_v22 = vmax.f32 %v2946_v19, %v2949_v28  ;;  %v1142_v25 = vmax.f32 %v3140_v53, %v1141_v4 }
 0x322   : > { %v1468_v2 = vmax.f32 %v1466_v62, %v1467_v52  ;;  %v1480_v62 = vsel %vm1090_vm14, %v1447_v27, -inf  ;;  %v1077_v19 = vsel %vm3015_vm15, %v3028_v17, -inf  ;;  %v1118_v28 = vmax.f32 %v1116_v8, %v1117_v1 }
 0x323   : > { %v986_v32 = vpop.permute.xlu1 %985  ;;  %v1503_v34 = vmax.f32 %v3461_v22, %v1502_v47  ;;  %v1481_v13 = vmax.f32 %v1479_v42, %v1480_v62  ;;  %v1130_v17 = vsel %vm1090_vm14, %v1080_v63, -inf  ;;  %v1143_v53 = vsel %vm1090_vm14, %v1077_v19, -inf }
 0x324   : > { %v3148_v6 = vpop.permute.xlu0 %970  ;;  %v1514_v15 = vmax.f32 %v1105_v54, %v1468_v2  ;;  %v1441_v54 = vsel %vm3020_vm1, %v3092_v61, -inf  ;;  %v1084_v31 = vsel %vm3050_vm8, %v986_v32, -inf  ;;  %v1131_v37 = vmax.f32 %v1129_v35, %v1130_v17  ;;  %v1648_v17 = vld [vmem:[%s3345_s8 + $0x10] sm:$0xff] (%p782_p1) }
 0x325   : > { %v1505_v61 = vmax.f32 %v1503_v34, %v1504_v3  ;;  %v1506_v51 = vsel %vm1090_vm14, %v1441_v54, -inf  ;;  %v1081_v57 = vsel %vm3036_vm6, %v3148_v6, -inf  ;;  %v1132_v23 = vsel %vm1090_vm14, %v1084_v31, -inf  ;;  %v1647_v31 = vld [vmem:[%s3345_s8 + $0x8] sm:$0xff] (%p782_p1) }
 0x326   : > { %vm1518_vm0 = vcmp.eq.f32.partialorder %v1514_v15, -inf  ;;  %v1144_v26 = vmax.f32 %v1142_v25, %v1143_v53  ;;  %v1145_v27 = vsel %vm1090_vm14, %v1081_v57, -inf  ;;  %v1133_v4 = vmax.f32 %v1131_v37, %v1132_v23  ;;  %v1833_v53 = vld [vmem:[%s3350_s13 + $0x8] sm:$0xff] (%p782_p1) }
 0x327   : > { %v1335_v56 = vpop.permute.xlu1 %1334  ;;  %v1522_v36 = vsel %vm1518_vm0, 0.0, %v1514_v15  ;;  %v1507_v6 = vmax.f32 %v1505_v61, %v1506_v51  ;;  %2184 = vmatprep.subr.mxu1 (%p782_p1), %v1833_v53 }
 0x328   : > { %v1001_v44 = vpop.permute.xlu0 %1000  ;;  %1526 = vxpose.xlu0.b32.start [1/4] (short) (narrow) %v1522_v36, 16  ;;  %v1445_v15 = vsel %vm3040_vm7, %v1335_v56, -inf  ;;  %v1146_v1 = vmax.f32 %v1144_v26, %v1145_v27  ;;  %2185 = vmatpush3.msra.mxu1 (%p782_p1), %v1833_v53 }
 0x329   : > { %v1087_v45 = vsel %vm3071_vm10, %v1001_v44, -inf  ;;  %v1508_v5 = vsel %vm1090_vm14, %v1445_v15, -inf }
 0x32a   : > { %v1119_v12 = vsel %vm1090_vm14, %v1087_v45, -inf  ;;  %v1509_v34 = vmax.f32 %v1507_v6, %v1508_v5 }
 0x32b   : > { %v1365_v52 = vpop.permute.xlu1 %1364  ;;  %v1120_v43 = vmax.f32 %v1118_v28, %v1119_v12 }
 0x32c   : > { %v1350_v11 = vpop.permute.xlu0 %1349  ;;  %v1451_v2 = vsel %vm3105_vm11, %v1365_v52, -inf }
 0x32d   : > { %v1482_v46 = vsel %vm1090_vm14, %v1451_v2, -inf  ;;  %v1448_v30 = vsel %vm3054_vm9, %v1350_v11, -inf }
 0x32e   : > { %v1483_v48 = vmax.f32 %v1481_v13, %v1482_v46  ;;  %v1495_v60 = vsel %vm1090_vm14, %v1448_v30, -inf  ;;  %v1646_v46 = vld [vmem:[%s3345_s8] sm:$0xff] (%p782_p1) }
 0x32f   : > { %v1005_v20 = vpop.permute.xlu1 %1004  ;;  %v1496_v36 = vmax.f32 %v1494_v9, %v1495_v60 }
 0x330   : > { %v990_v32 = vpop.permute.xlu0 %989  ;;  %v1088_v21 = vsel %vm3071_vm10, %v1005_v20, -inf  ;;  %v1515_v47 = vmax.f32 %v1120_v43, %v1483_v48  ;;  %v1832_v43 = vld [vmem:[%s3350_s13] sm:$0xff] (%p782_p1)  ;;  %v3275_v48 = vld [vmem:[%s3349_s12 + $0x18] sm:$0xff] (%p782_p1) }
 0x331   : > { %v1085_v49 = vsel %vm3050_vm8, %v990_v32, -inf  ;;  %v1134_v58 = vsel %vm1090_vm14, %v1088_v21, -inf  ;;  %2186 = vmatprep.subr.mxu1 (%p782_p1), %v1832_v43 }
 0x332   : > { %vm1519_vm2 = vcmp.eq.f32.partialorder %v1515_v47, -inf  ;;  %v1147_v18 = vsel %vm1090_vm14, %v1085_v49, -inf  ;;  %v1135_v35 = vmax.f32 %v1133_v4, %v1134_v58  ;;  %2187 = vmatpush3.msra.mxu1 (%p782_p1), %v1832_v43 }
 0x333   : > { %v1369_v33 = vpop.permute.xlu1 %1368  ;;  %v1523_v44 = vsel %vm1519_vm2, 0.0, %v1515_v47  ;;  %v1148_v62 = vmax.f32 %v1146_v1, %v1147_v18  ;;  %2194 = vmatprep.subr.mxu1 (%p782_p1), %v3275_v48 }
 0x334   : > { %v1354_v56 = vpop.permute.xlu0 %1353  ;;  %v1452_v50 = vsel %vm3105_vm11, %v1369_v33, -inf  ;;  %1527 = vxpose.xlu0.b32.cont [2/4] (short) (narrow) %v1523_v44, 16 }
 0x335   : > { %v1449_v7 = vsel %vm3054_vm9, %v1354_v56, -inf  ;;  %v1497_v45 = vsel %vm1090_vm14, %v1452_v50, -inf }
 0x336   : > { %v1510_v22 = vsel %vm1090_vm14, %v1449_v7, -inf  ;;  %v1498_v8 = vmax.f32 %v1496_v36, %v1497_v45 }
 0x337   : > { %v1373_v25 = vpop.permute.xlu1 %1372  ;;  %v1511_v42 = vmax.f32 %v1509_v34, %v1510_v22 }
 0x338   : > { %v1009_v41 = vpop.permute.xlu0 %1008  ;;  %v1453_v63 = vsel %vm3105_vm11, %v1373_v25, -inf  ;;  %v1516_v3 = vmax.f32 %v1135_v35, %v1498_v8 }
 0x339   : > { %v1089_v16 = vsel %vm3071_vm10, %v1009_v41, -inf  ;;  %v1512_v19 = vsel %vm1090_vm14, %v1453_v63, -inf }
 0x33a   : > { %v1149_v28 = vsel %vm1090_vm14, %v1089_v16, -inf  ;;  %v1513_v12 = vmax.f32 %v1511_v42, %v1512_v19  ;;  %vm1520_vm3 = vcmp.eq.f32.partialorder %v1516_v3, -inf }
 0x33b   : > { %v1150_v52 = vmax.f32 %v1148_v62, %v1149_v28  ;;  %v1524_v11 = vsel %vm1520_vm3, 0.0, %v1516_v3 }
 0x33c   : > { %1528 = vxpose.xlu0.b32.cont [3/4] (short) (narrow) %v1524_v11, 16 }
 0x33d   : > { %v1517_v59 = vmax.f32 %v1150_v52, %v1513_v12 }
 0x33f   : > { %vm1521_vm12 = vcmp.eq.f32.partialorder %v1517_v59, -inf }
 0x340   : > { %v1525_v54 = vsel %vm1521_vm12, 0.0, %v1517_v59 }
 0x341   : > { %1529 = vxpose.xlu0.b32.end [4/4] (short) (narrow) %v1525_v54, 16 }
 0x3b1   : > { %v1542_v38 = vpop.trf.xlu0 }
 0x3b2   : > { %2167 = vmatprep.mubr.msk.f32.mxu0 %vm581_vm4, %v1542_v38 }
 0x3b5   : > { %v1543_v0 = vpop.trf.xlu0 }
 0x3b6   : > { %2168 = vmatmul.mubr.msk.f32.vlgmr.msra.gmra.mxu0 %vm581_vm4, %v1543_v0 }
 0x3b7   :  { %2178 = vmatprep.mubr.msk.f32.mxu0 (%p782_p1), %vm581_vm4, %v2689_v24  ;;  %2171 = vmatpush3.msra.mxu0 (%p782_p1), %v1649_v14 }
 0x3b8   :  { %2172 = vmatprep.subr.mxu0 (%p782_p1), %v1648_v17 }
 0x3b9   :  { %2173 = vmatpush3.msra.mxu0 (%p782_p1), %v1648_v17 }
 0x3ba   :  { %2174 = vmatprep.subr.mxu0 (%p782_p1), %v1647_v31 }
 0x3bb   :  { %2175 = vmatpush3.msra.mxu0 (%p782_p1), %v1647_v31 }
 0x3bc   :  { %2176 = vmatprep.subr.mxu0 (%p782_p1), %v1646_v46 }
 0x3bd   :  { %2177 = vmatpush3.msra.mxu0 (%p782_p1), %v1646_v46 }
 0x3be   :  { %2179 = vmatmul.mubr.msk.f32.vlgmr.msra.gmra.mxu0 (%p782_p1), %vm581_vm4, %v2691_v29 }
 0x3bf   :  { %2181 = vmatprep.mubr.msk.f32.mxu0 (%p782_p1), %vm581_vm4, %v2693_v39 }
 0x3c2   :  { %2182 = vmatmul.mubr.msk.f32.gmra.mxu0 (%p782_p1), %vm581_vm4, %v2695_v40 }
 0x475   :  { %784 = sbr.rel (!%p782_p1) target bundleno = 576 (0x240), region = 115 }
 0x476   : > { %v2169_v13 = vpop.f32.mrf.mxu0 }
 0x477   : > { %1641 = vst.msk [vmem:[%s1639_s21 + $0x8] sm:$0xff] %vm1090_vm14, %v2169_v13 }
 0x478   : > { %v1630_v2 = vpop.f32.mrf.mxu0 }
 0x479   : > { %1640 = vst.msk [vmem:[%s1639_s21] sm:$0xff] %vm1090_vm14, %v1630_v2 }
 0x47e   :  { %v2180_v61 = vpop.f32.mrf.mxu0 }
 0x480   :  { %v1643_v30 = vld [vmem:[#allocation4 + $0x8] sm:$0xff]  ;;  %v1642_v51 = vld [vmem:[#allocation4] sm:$0xff]  ;;  %v1728_v20 = vpop.f32.mrf.mxu0  ;;  %v1645_v32 = vld [vmem:[#allocation4 + $0x18] sm:$0xff] }
 0x481   :  { %v1748_v57 = vadd.f32 %v2180_v61, %v1643_v30  ;;  %v1747_v15 = vadd.f32 %v1728_v20, %v1642_v51  ;;  %v1644_v47 = vld [vmem:[#allocation4 + $0x10] sm:$0xff]  ;;  %v1766_v30 = vld [vmem:[%s3347_s10] sm:$0x1] }
 0x482   :  { %v2183_v21 = vpop.f32.mrf.mxu0 }
 0x483   :  { %v1759_v23 = vadd.f32 %v2099_v55, %v1748_v57  ;;  %v1758_v37 = vadd.f32 %v2099_v55, %v1747_v15  ;;  %v1750_v26 = vadd.f32 %v2183_v21, %v1645_v32  ;;  %v2100_v57 = vld [vmem:[%s3348_s11] ss:$0 sm:$0xff] }
 0x484   :  { %v1738_v60 = vpop.f32.mrf.mxu0 }
 0x485   :  { %v1763_v49 = vmax.f32 %v1759_v23, 0.0  ;;  %v1762_v9 = vmax.f32 %v1758_v37, 0.0  ;;  %v1761_v6 = vadd.f32 %v2099_v55, %v1750_v26  ;;  %v1749_v27 = vadd.f32 %v1738_v60, %v1644_v47  ;;  %v1830_v26 = vld [vmem:[%s3349_s12 + $0x10] sm:$0xff] }
 0x487   :  { %v1769_v4 = vsel %vm1090_vm14, %v1762_v9, 0.0  ;;  %v1760_v5 = vadd.f32 %v2099_v55, %v1749_v27  ;;  %v1770_v58 = vsel %vm1090_vm14, %v1763_v49, 0.0  ;;  %v1765_v33 = vmax.f32 %v1761_v6, 0.0 }
 0x488   :  { %v1771_v44 = vadd.f32 %v1770_v58, %v1769_v4 }
 0x489   :  { %v1764_v56 = vmax.f32 %v1760_v5, 0.0  ;;  %v1774_v50 = vsel %vm1090_vm14, %v1765_v33, 0.0 }
 0x48b   :  { %v1772_v36 = vsel %vm1090_vm14, %v1764_v56, 0.0 }
 0x48c   :  { %v1773_v18 = vadd.f32 %v1772_v36, %v1771_v44 }
 0x48e   :  { %v1775_v7 = vadd.f32 %v1774_v50, %v1773_v18 }
 0x490   :  { %v1776_v1 = vrot.slane %v1775_v7, 4 }
 0x492   :  { %v1777_v45 = vadd.f32 %v1776_v1, %v1775_v7 }
 0x494   :  { %v1778_v22 = vrot.slane %v1777_v45, 2 }
 0x496   :  { %v1779_v34 = vadd.f32 %v1778_v22, %v1777_v45 }
 0x498   :  { %v1780_v35 = vrot.slane %v1779_v34, 1 }
 0x49a   :  { %v1781_v8 = vadd.f32 %v1780_v35, %v1779_v34 }
 0x49c   :  { %v1782_v62 = vmul.f32 0.03125, %v1781_v8 }
 0x49e   :  { %v1785_v25 = vsub.f32 %v1764_v56, %v1782_v62  ;;  %v1783_v41 = vsub.f32 %v1762_v9, %v1782_v62  ;;  %v1784_v42 = vsub.f32 %v1763_v49, %v1782_v62  ;;  %v1786_v63 = vsub.f32 %v1765_v33, %v1782_v62  ;;  %v1828_v49 = vld [vmem:[%s3349_s12] sm:$0xff] }
 0x4a0   :  { %v1789_v16 = vmul.f32 %v1785_v25, %v1785_v25  ;;  %v1787_v3 = vmul.f32 %v1783_v41, %v1783_v41  ;;  %v1788_v19 = vmul.f32 %v1784_v42, %v1784_v42  ;;  %v1790_v28 = vmul.f32 %v1786_v63, %v1786_v63 }
 0x4a2   :  { %v1791_v12 = vsel %vm1090_vm14, %v1787_v3, 0.0  ;;  %v1792_v52 = vsel %vm1090_vm14, %v1788_v19, 0.0  ;;  %v1794_v59 = vsel %vm1090_vm14, %v1789_v16, 0.0  ;;  %v1796_v38 = vsel %vm1090_vm14, %v1790_v28, 0.0 }
 0x4a3   :  { %v1793_v11 = vadd.f32 %v1792_v52, %v1791_v12 }
 0x4a5   :  { %v1795_v54 = vadd.f32 %v1794_v59, %v1793_v11 }
 0x4a7   :  { %v1797_v0 = vadd.f32 %v1796_v38, %v1795_v54 }
 0x4a9   :  { %v1798_v13 = vrot.slane %v1797_v0, 4 }
 0x4ab   :  { %v1799_v2 = vadd.f32 %v1798_v13, %v1797_v0 }
 0x4ad   :  { %v1800_v14 = vrot.slane %v1799_v2, 2 }
 0x4af   :  { %v1801_v17 = vadd.f32 %v1800_v14, %v1799_v2 }
 0x4b1   :  { %v1802_v31 = vrot.slane %v1801_v17, 1 }
 0x4b3   :  { %v1803_v46 = vadd.f32 %v1802_v31, %v1801_v17 }
 0x4b5   :  { %v1804_v53 = vmul.f32 0.03125, %v1803_v46 }
 0x4b7   :  { %v1805_v43 = vadd.f32 1e-05, %v1804_v53 }
 0x4b9   :  { %2237 = vrsqrt.f32 %v1805_v43 }
 0x4c6   :  { %v2238_v61 = vpop.eup %2237 }
 0x4c7   :  { %v1807_v55 = vmul.f32 %v2238_v61, %v1766_v30 }
 0x4c9   :  { %v1812_v51 = vrot.slane %v1807_v55, %v2375_v10  ;;  %v1829_v10 = vld [vmem:[%s3349_s12 + $0x8] sm:$0xff] }
 0x4cb   :  { %v1814_v20 = vmul.f32 %v1812_v51, %v1783_v41  ;;  %v1815_v32 = vmul.f32 %v1812_v51, %v1784_v42  ;;  %v1816_v23 = vmul.f32 %v1812_v51, %v1785_v25  ;;  %v1817_v47 = vmul.f32 %v1812_v51, %v1786_v63 }
 0x4cd   :  { %v1824_v15 = vadd.f32 %v2100_v57, %v1814_v20  ;;  %v1825_v21 = vadd.f32 %v2100_v57, %v1815_v32  ;;  %v1826_v37 = vadd.f32 %v2100_v57, %v1816_v23  ;;  %v1827_v60 = vadd.f32 %v2100_v57, %v1817_v47 }
 0x4cf   :  { %2188 = vmatprep.mubr.msk.f32.mxu1 %vm1090_vm14, %v1824_v15 }
 0x4d0   :  { %2189 = vmatmul.mubr.msk.f32.vlgmr.msra.gmra.mxu1 %vm1090_vm14, %v1825_v21 }
 0x4d1   :  { %2195 = vmatpush3.msra.mxu1 %v3275_v48  ;;  %2191 = vmatprep.mubr.msk.f32.mxu1 %vm1090_vm14, %v1826_v37 }
 0x4d2   :  { %2196 = vmatprep.subr.mxu1 %v1830_v26 }
 0x4d3   :  { %2197 = vmatpush3.msra.mxu1 %v1830_v26 }
 0x4d4   :  { %2198 = vmatprep.subr.mxu1 %v1829_v10  ;;  %2192 = vmatmul.mubr.msk.f32.gmra.mxu1 %vm1090_vm14, %v1827_v60 }
 0x4d5   :  { %2199 = vmatpush3.msra.mxu1 %v1829_v10  ;;  %2202 = vmatprep.mubr.msk.f32.mxu1 %vm581_vm4, %v2689_v24  ;;  %v2109_v24 = vld [vmem:[%s3351_s14] ss:$0 sm:$0xff] }
 0x4d6   :  { %2200 = vmatprep.subr.mxu1 %v1828_v49 }
 0x4d7   :  { %2201 = vmatpush3.msra.mxu1 %v1828_v49 }
 0x4d8   :  { %2203 = vmatmul.mubr.msk.f32.vlgmr.msra.gmra.mxu1 %vm581_vm4, %v2691_v29 }
 0x4d9   :  { %2205 = vmatprep.mubr.msk.f32.mxu1 %vm581_vm4, %v2693_v39 }
 0x4dc   :  { %2206 = vmatmul.mubr.msk.f32.gmra.mxu1 %vm581_vm4, %v2695_v40 }
 0x590   :  { %v2190_v48 = vpop.f32.mrf.mxu1 }
 0x592   :  { %v1912_v9 = vpop.f32.mrf.mxu1 }
 0x594   :  { %v2193_v6 = vpop.f32.mrf.mxu1 }
 0x596   :  { %v1922_v27 = vpop.f32.mrf.mxu1 }
 0x598   :  { %v2204_v4 = vpop.f32.mrf.mxu1 }
 0x599   :  { %v2003_v5 = vadd.f32 %v2204_v4, %v2190_v48 }
 0x59a   :  { %v1997_v58 = vpop.f32.mrf.mxu1 }
 0x59b   :  { %v2024_v33 = vadd.f32 %v2109_v24, %v2003_v5  ;;  %v1998_v56 = vadd.f32 %v1997_v58, %v1912_v9 }
 0x59c   :  { %v2207_v29 = vpop.f32.mrf.mxu1 }
 0x59d   :  { %v2028_v44 = vmax.f32 %v2024_v33, 0.0  ;;  %v2023_v36 = vadd.f32 %v2109_v24, %v1998_v56  ;;  %v2013_v39 = vadd.f32 %v2207_v29, %v2193_v6 }
 0x59e   :  { %v2007_v18 = vpop.f32.mrf.mxu1 }
 0x59f   :  { %2032 = vst.msk [vmem:[%s3352_s15 + $0x8] sm:$0xff] %vm1090_vm14, %v2028_v44  ;;  %v2027_v40 = vmax.f32 %v2023_v36, 0.0  ;;  %v2026_v50 = vadd.f32 %v2109_v24, %v2013_v39  ;;  %v2008_v7 = vadd.f32 %v2007_v18, %v1922_v27 }
 0x5a1   :  { %2031 = vst.msk [vmem:[%s3352_s15] sm:$0xff] %vm1090_vm14, %v2027_v40  ;;  %v2030_v1 = vmax.f32 %v2026_v50, 0.0  ;;  %v2025_v45 = vadd.f32 %v2109_v24, %v2008_v7 }
 0x5a3   :  { %2034 = vst.msk [vmem:[%s3352_s15 + $0x18] sm:$0xff] %vm1090_vm14, %v2030_v1  ;;  %v2029_v22 = vmax.f32 %v2025_v45, 0.0 }
 0x5a5   :  { %2033 = vst.msk [vmem:[%s3352_s15 + $0x10] sm:$0xff] %vm1090_vm14, %v2029_v22 }

</bundles_post_ra>
